<compile_context>
chip_gen: v7x
topology: tpu7x:2x2x1
jax: 0.10.0
libtpu: 0.0.40
codegen_flags: <defaults>
</compile_context>

<pallas_src>
import functools

import jax
import jax.numpy as jnp
import numpy as np
from jax.experimental import pallas as pl
from jax.experimental.pallas import tpu as pltpu


# --------------------------- chip-aware defaults -----------------------------

def _chip_defaults():
    """(depthwise/scratch dtype, vmem_limit_bytes) chosen per TPU generation."""
    kind = ""
    try:
        kind = jax.devices()[0].device_kind.lower()
    except Exception:
        pass
    # v6e / v7x have a native bf16 VPU path -> halve scratch bytes and VALU
    # work in the depthwise stage.  v5e (and unknown chips) stay f32.
    bf16_vpu = any(t in kind for t in ("v6", "v7", "trillium"))
    dw_dtype = jnp.bfloat16 if bf16_vpu else jnp.float32
    # v7x: 64 MiB physical VMEM per core -> lower scoped limit.
    vmem_limit = (48 if "v7" in kind else 64) * 1024 * 1024
    try:
        cap = pltpu.get_tpu_info().vmem_capacity_bytes
        vmem_limit = min(vmem_limit, int(cap) * 3 // 4)
    except Exception:
        pass
    return dw_dtype, max(vmem_limit, 16 * 1024 * 1024)


def _pick_strip_rows(H_out, W_out, stride, W, hidden, dw_bytes, vmem_limit):
    """Output-row strip height: divides H_out, keeps the out-block second-minor
    dim 8-aligned, fills the MXU M dim, caps the scratch VMEM footprint."""
    divisors = [d for d in range(1, H_out + 1)
                if H_out % d == 0 and (d % 8 == 0 or d == H_out)]

    def scratch_bytes(d):
        return ((d - 1) * stride + 3) * (W + 2) * hidden * dw_bytes

    cands = [d for d in divisors if d * W_out >= 256]
    so = min(cands) if cands else H_out
    if H_out // so == 1:
        # Split once more (feeds both v7x TCs / deepens the pipeline) as long
        # as the expand/proj matmul M stays >= 128.
        smaller = [d for d in divisors if d < so and d * W_out >= 128]
        if smaller:
            so = max(smaller)
    while scratch_bytes(so) > vmem_limit // 4:
        smaller = [d for d in divisors if d < so]
        if not smaller:
            break
        so = max(smaller)
    return so


# ------------------------------ fused kernel --------------------------------

def _fused_inverted_residual_kernel(*refs, stride, expand, use_shortcut,
                                    n_strips, mxu_dtype, dw_dtype):
    if expand:
        (x_ref, ew_ref, es_ref, eb_ref,
         dw_ref, dws_ref, dwb_ref,
         pw_ref, ps_ref, pb_ref,
         o_ref, xe_ref) = refs
    else:
        (x_ref,
         dw_ref, dws_ref, dwb_ref,
         pw_ref, ps_ref, pb_ref,
         o_ref, xe_ref) = refs

    _, H, W, Cin = x_ref.shape
    R, Wp2, Ch = xe_ref.shape                 # ((so-1)*stride + 3, W+2, hidden)
    _, _, Cout = o_ref.shape
    W_out = (W - 1) // stride + 1
    so = o_ref.shape[1] // W_out              # output rows per strip
    s = pl.program_id(1)                      # strip index

    # Static halo bookkeeping (Python ints; bot_pad is 0 or 1 in practice).
    bot_pad = max(0, (n_strips - 1) * so * stride - 1 + R - H)

    # ---- Stage 1: 1x1 expand conv (MXU bf16-in / f32-acc) + BN + ReLU6 -----
    def fill(x_start, n_rows, dst_off):
        xs = x_ref[0, pl.ds(x_start, n_rows), :, :]          # (n_rows, W, Cin)
        x2 = xs.reshape(n_rows * W, Cin)
        if expand:
            y = jnp.dot(x2.astype(mxu_dtype), ew_ref[...],
                        preferred_element_type=jnp.float32)
            y = jnp.clip(y * es_ref[...] + eb_ref[...], 0.0, 6.0)
        else:
            y = x2.astype(jnp.float32)
        xe_ref[dst_off:dst_off + n_rows, 1:W + 1, :] = (
            y.reshape(n_rows, W, Ch).astype(dw_dtype))

    # Zero only the 1-pixel halo every step (interior is fully overwritten).
    zero_col = jnp.zeros((R, 1, Ch), dw_dtype)
    xe_ref[:, 0:1, :] = zero_col
    xe_ref[:, W + 1:W + 2, :] = zero_col
    zero_row = jnp.zeros((1, Wp2, Ch), dw_dtype)

    if n_strips == 1:
        fill(0, R - 1 - bot_pad, 1)
        xe_ref[0:1, :, :] = zero_row
        for r in range(bot_pad):
            xe_ref[R - 1 - r:R - r, :, :] = zero_row
    else:
        @pl.when(s == 0)                      # top strip: halo row above
        def _():
            fill(0, R - 1, 1)
            xe_ref[0:1, :, :] = zero_row

        @pl.when(s == n_strips - 1)           # bottom strip
        def _():
            fill((n_strips - 1) * so * stride - 1, R - bot_pad, 0)
            for r in range(bot_pad):
                xe_ref[R - 1 - r:R - r, :, :] = zero_row

        if n_strips > 2:                      # interior strips: no halo rows
            @pl.when(jnp.logical_and(s != 0, s != n_strips - 1))
            def _():
                fill(s * so * stride - 1, R, 0)

    # ---- Stage 2: 3x3 depthwise conv (stride baked in) + BN + ReLU6 --------
    # Tap MACs in dw_dtype (bf16 on v6e/v7x); BN scale/bias applied in f32.
    acc = jnp.zeros((so, W_out, Ch), dw_dtype)
    for kh in range(3):
        for kw in range(3):
            if stride == 1:
                win = xe_ref[kh:kh + so, kw:kw + W_out, :]
            else:
                win = xe_ref[pl.ds(kh, so, stride=stride),
                             pl.ds(kw, W_out, stride=stride), :]
            acc = acc + win * dw_ref[kh, kw, :]
    h = jnp.clip(acc.astype(jnp.float32) * dws_ref[...] + dwb_ref[...],
                 0.0, 6.0)

    # ---- Stage 3: 1x1 projection conv (MXU) + BN (+ fused residual) --------
    z = jnp.dot(h.reshape(so * W_out, Ch).astype(mxu_dtype), pw_ref[...],
                preferred_element_type=jnp.float32)
    z = z * ps_ref[...] + pb_ref[...]
    if use_shortcut:
        # Re-read the x strip right before the add (short live range).
        row0 = s * so
        if so % 8 == 0:
            row0 = pl.multiple_of(row0, 8)
        xs = x_ref[0, pl.ds(row0, so), :, :]
        z = z + xs.reshape(so * W_out, Cout).astype(jnp.float32)
    o_ref[...] = z.reshape(1, so * W_out, Cout).astype(o_ref.dtype)


# -------------------------------- wrappers -----------------------------------

def _fold_bn(bn, eps=1e-5):
    gamma, beta, mean, var = bn
    scale = gamma / jnp.sqrt(var + eps)
    bias = beta - mean * scale
    return scale, bias


def inverted_residual_nhwc(x_nhwc, params, *, stride, expand_ratio,
                           mxu_dtype=jnp.bfloat16, dw_dtype=None,
                           vmem_limit_bytes=None):
    """Fused InvertedResidual forward on an NHWC input (single pallas_call)."""
    N, H, W, Cin = x_nhwc.shape
    hidden, Cout = params["proj_w"].shape
    expand = expand_ratio != 1
    use_shortcut = (stride == 1) and (Cin == Cout)
    H_out = (H - 1) // stride + 1
    W_out = (W - 1) // stride + 1

    default_dw, default_vmem = _chip_defaults()
    dw_dtype = default_dw if dw_dtype is None else dw_dtype
    vmem_limit_bytes = (default_vmem if vmem_limit_bytes is None
                        else vmem_limit_bytes)

    so = _pick_strip_rows(H_out, W_out, stride, W, hidden,
                          jnp.dtype(dw_dtype).itemsize, vmem_limit_bytes)
    n_strips = H_out // so
    R = (so - 1) * stride + 3                  # scratch rows incl. 1-px halo

    def _const_spec(shape):
        nd = len(shape)
        return pl.BlockSpec(shape, lambda n, s, _nd=nd: (0,) * _nd)

    # Full (H, W) slab of batch n; block index is constant across the strip
    # axis so the pipeline keeps it resident instead of re-DMAing per strip.
    in_specs = [pl.BlockSpec((1, H, W, Cin), lambda n, s: (n, 0, 0, 0))]
    inputs = [x_nhwc]

    if expand:
        es, eb = _fold_bn(params["exp_bn"])
        in_specs += [_const_spec((Cin, hidden)),
                     _const_spec((1, hidden)), _const_spec((1, hidden))]
        inputs += [params["exp_w"].astype(mxu_dtype),
                   es.reshape(1, hidden), eb.reshape(1, hidden)]

    dws, dwb = _fold_bn(params["dw_bn"])
    ps, pb = _fold_bn(params["proj_bn"])
    in_specs += [_const_spec((3, 3, hidden)),
                 _const_spec((1, hidden)), _const_spec((1, hidden)),
                 _const_spec((hidden, Cout)),
                 _const_spec((1, Cout)), _const_spec((1, Cout))]
    inputs += [params["dw_w"].astype(dw_dtype),     # taps in VPU dtype
               dws.reshape(1, hidden), dwb.reshape(1, hidden),
               params["proj_w"].astype(mxu_dtype),
               ps.reshape(1, Cout), pb.reshape(1, Cout)]

    kernel = functools.partial(
        _fused_inverted_residual_kernel,
        stride=stride, expand=expand, use_shortcut=use_shortcut,
        n_strips=n_strips, mxu_dtype=mxu_dtype, dw_dtype=dw_dtype)

    out = pl.pallas_call(
        kernel,
        out_shape=jax.ShapeDtypeStruct((N, H_out * W_out, Cout), x_nhwc.dtype),
        grid_spec=pltpu.PrefetchScalarGridSpec(
            num_scalar_prefetch=0,
            grid=(N, n_strips),
            in_specs=in_specs,
            out_specs=pl.BlockSpec((1, so * W_out, Cout),
                                   lambda n, s: (n, s, 0)),
            scratch_shapes=[pltpu.VMEM((R, W + 2, hidden), dw_dtype)]),
        compiler_params=pltpu.CompilerParams(
            dimension_semantics=("parallel", "parallel"),
            vmem_limit_bytes=vmem_limit_bytes),
    )(*inputs)
    return out.reshape(N, H_out, W_out, Cout)


def inverted_residual(x_nchw, params, *, stride, expand_ratio, **kwargs):
    """PyTorch-layout (NCHW) entry point matching InvertedResidual.forward.

    Prefer inverted_residual_nhwc inside an NHWC model: the two transposes
    here are HBM round-trips done by XLA outside the fused kernel."""
    x = jnp.transpose(x_nchw, (0, 2, 3, 1))
    y = inverted_residual_nhwc(x, params, stride=stride,
                               expand_ratio=expand_ratio, **kwargs)
    return jnp.transpose(y, (0, 3, 1, 2))


# ----------------------- deterministic parameter init -----------------------

def init_params(key, in_ch, out_ch, expand_ratio):
    hidden = in_ch * expand_ratio
    ks = jax.random.split(key, 6)

    def bn(k, c):
        k0, k1, k2, k3 = jax.random.split(k, 4)
        gamma = 1.0 + 0.1 * jax.random.normal(k0, (c,), jnp.float32)
        beta = 0.1 * jax.random.normal(k1, (c,), jnp.float32)
        mean = 0.1 * jax.random.normal(k2, (c,), jnp.float32)
        var = jnp.abs(jax.random.normal(k3, (c,), jnp.float32)) + 0.5
        return (gamma, beta, mean, var)

    return {
        "exp_w": 0.1 * jax.random.normal(ks[0], (in_ch, hidden), jnp.float32),
        "exp_bn": bn(ks[1], hidden),
        "dw_w": 0.1 * jax.random.normal(ks[2], (3, 3, hidden), jnp.float32),
        "dw_bn": bn(ks[3], hidden),
        "proj_w": 0.1 * jax.random.normal(ks[4], (hidden, out_ch), jnp.float32),
        "proj_bn": bn(ks[5], out_ch),
    }


# ------------------------------ pure-JAX reference ---------------------------

def reference(x_nchw, params, *, stride, expand_ratio,
              mxu_dtype=jnp.float32, dw_dtype=jnp.float32):
    """Pure-JAX reference that mirrors the kernel's precision policy."""
    in_ch = x_nchw.shape[1]
    out_ch = params["proj_w"].shape[1]
    use_shortcut = (stride == 1) and (in_ch == out_ch)
    x = jnp.transpose(x_nchw, (0, 2, 3, 1))
    h = x
    if expand_ratio != 1:
        sc, bi = _fold_bn(params["exp_bn"])
        h = jnp.einsum("nhwc,cd->nhwd", h.astype(mxu_dtype),
                       params["exp_w"].astype(mxu_dtype),
                       preferred_element_type=jnp.float32) * sc + bi
        h = jnp.clip(h, 0.0, 6.0)
    N, H, W, C = h.shape
    H_out = (H - 1) // stride + 1
    W_out = (W - 1) // stride + 1
    hp = jnp.pad(h.astype(dw_dtype), ((0, 0), (1, 1), (1, 1), (0, 0)))
    dw = params["dw_w"].astype(dw_dtype)
    acc = jnp.zeros((N, H_out, W_out, C), dw_dtype)
    for kh in range(3):
        for kw in range(3):
            win = hp[:, kh:kh + (H_out - 1) * stride + 1:stride,
                     kw:kw + (W_out - 1) * stride + 1:stride, :]
            acc = acc + win * dw[kh, kw, :]
    sc, bi = _fold_bn(params["dw_bn"])
    h = jnp.clip(acc.astype(jnp.float32) * sc + bi, 0.0, 6.0)
    sc, bi = _fold_bn(params["proj_bn"])
    h = jnp.einsum("nhwc,cd->nhwd", h.astype(mxu_dtype),
                   params["proj_w"].astype(mxu_dtype),
                   preferred_element_type=jnp.float32) * sc + bi
    if use_shortcut:
        h = h + x
    return jnp.transpose(h, (0, 3, 1, 2))


# ----------------------------------- main ------------------------------------

if __name__ == "__main__":
    N, in_ch, H, W = 2, 8, 16, 16
    out_ch, stride, expand_ratio = 8, 1, 2   # exercises expand + shortcut path

    key = jax.random.PRNGKey(0)
    kx, kp = jax.random.split(key)
    x_nchw = jax.random.normal(kx, (N, in_ch, H, W), jnp.float32)
    params = init_params(kp, in_ch, out_ch, expand_ratio)

    dw_dtype, vmem_limit = _chip_defaults()
    fwd = jax.jit(functools.partial(inverted_residual, stride=stride,
                                    expand_ratio=expand_ratio,
                                    dw_dtype=dw_dtype,
                                    vmem_limit_bytes=vmem_limit))
    y = jax.block_until_ready(fwd(x_nchw, params))
    assert y.shape == (N, out_ch, H, W)

    # Check 1: precision-matched reference (same bf16-MXU / depthwise dtype
    # policy as the kernel).
    y_ref = reference(x_nchw, params, stride=stride, expand_ratio=expand_ratio,
                      mxu_dtype=jnp.bfloat16, dw_dtype=dw_dtype)
    tol1 = 1e-3 if jnp.dtype(dw_dtype) == jnp.dtype(jnp.float32) else 1e-2
    np.testing.assert_allclose(np.asarray(y), np.asarray(y_ref),
                               rtol=tol1, atol=tol1)

    # Check 2: full-f32 reference at a looser tolerance bounding bf16 rounding.
    y_f32 = reference(x_nchw, params, stride=stride, expand_ratio=expand_ratio,
                      mxu_dtype=jnp.float32, dw_dtype=jnp.float32)
    np.testing.assert_allclose(np.asarray(y), np.asarray(y_f32),
                               rtol=5e-2, atol=5e-2)

    print("KERNEL_OK")
</pallas_src>

<mosaic_0001>
module attributes {stable_mosaic.version = 11 : i64} {
  func.func @_fused_inverted_residual_kernel(%arg0: i32, %arg1: i32, %arg2: memref<1x16x16x8xf32, #tpu.memory_space<vmem>>, %arg3: memref<8x16xbf16, #tpu.memory_space<vmem>>, %arg4: memref<1x16xf32, #tpu.memory_space<vmem>>, %arg5: memref<1x16xf32, #tpu.memory_space<vmem>>, %arg6: memref<3x3x16xf32, #tpu.memory_space<vmem>>, %arg7: memref<1x16xf32, #tpu.memory_space<vmem>>, %arg8: memref<1x16xf32, #tpu.memory_space<vmem>>, %arg9: memref<16x8xbf16, #tpu.memory_space<vmem>>, %arg10: memref<1x8xf32, #tpu.memory_space<vmem>>, %arg11: memref<1x8xf32, #tpu.memory_space<vmem>>, %arg12: memref<1x128x8xf32, #tpu.memory_space<vmem>>, %arg13: memref<10x18x16xf32, #tpu.memory_space<vmem>>) attributes {dimension_semantics = [#tpu.dimension_semantics<parallel>, #tpu.dimension_semantics<parallel>], iteration_bounds = array<i64: 2, 2>, scalar_prefetch = 0 : i64, scratch_operands = 1 : i64, tpu.core_type = #tpu.core_type<tc>, window_params = [{transform_indices = @transform_0, window_bounds = array<i64: 1, 16, 16, 8>}, {pipeline_mode = #tpu.pipeline_mode<synchronous>, transform_indices = @transform_1, window_bounds = array<i64: 8, 16>}, {pipeline_mode = #tpu.pipeline_mode<synchronous>, transform_indices = @transform_2, window_bounds = array<i64: 1, 16>}, {pipeline_mode = #tpu.pipeline_mode<synchronous>, transform_indices = @transform_3, window_bounds = array<i64: 1, 16>}, {pipeline_mode = #tpu.pipeline_mode<synchronous>, transform_indices = @transform_4, window_bounds = array<i64: 3, 3, 16>}, {pipeline_mode = #tpu.pipeline_mode<synchronous>, transform_indices = @transform_5, window_bounds = array<i64: 1, 16>}, {pipeline_mode = #tpu.pipeline_mode<synchronous>, transform_indices = @transform_6, window_bounds = array<i64: 1, 16>}, {pipeline_mode = #tpu.pipeline_mode<synchronous>, transform_indices = @transform_7, window_bounds = array<i64: 16, 8>}, {pipeline_mode = #tpu.pipeline_mode<synchronous>, transform_indices = @transform_8, window_bounds = array<i64: 1, 8>}, {pipeline_mode = #tpu.pipeline_mode<synchronous>, transform_indices = @transform_9, window_bounds = array<i64: 1, 8>}, {transform_indices = @transform_10, window_bounds = array<i64: 1, 128, 8>}]} {
    %cst = arith.constant 0.000000e+00 : f32
    %0 = vector.broadcast %cst : f32 to vector<10x1x16xf32>
    %c0 = arith.constant 0 : index
    %c0_0 = arith.constant 0 : index
    %c0_1 = arith.constant 0 : index
    %1 = vector.load %arg13[%c0, %c0_0, %c0_1] : memref<10x18x16xf32, #tpu.memory_space<vmem>>, vector<10x1x16xf32>
    tpu.vector_store %arg13[%c0, %c0_0, %c0_1], %0 {strides = array<i32>} : memref<10x18x16xf32, #tpu.memory_space<vmem>>, vector<10x1x16xf32>,
    %c0_2 = arith.constant 0 : index
    %c17 = arith.constant 17 : index
    %c0_3 = arith.constant 0 : index
    %2 = vector.load %arg13[%c0_2, %c17, %c0_3] : memref<10x18x16xf32, #tpu.memory_space<vmem>>, vector<10x1x16xf32>
    tpu.vector_store %arg13[%c0_2, %c17, %c0_3], %0 {strides = array<i32>} : memref<10x18x16xf32, #tpu.memory_space<vmem>>, vector<10x1x16xf32>,
    %cst_4 = arith.constant 0.000000e+00 : f32
    %3 = vector.broadcast %cst_4 : f32 to vector<1x18x16xf32>
    %c0_i32 = arith.constant 0 : i32
    %4 = arith.cmpi eq, %arg1, %c0_i32 : i32
    %5 = arith.extui %4 : i1 to i32
    %c0_i32_5 = arith.constant 0 : i32
    %6 = arith.cmpi ne, %5, %c0_i32_5 : i32
    scf.if %6 {
      %c0_79 = arith.constant 0 : index
      %c0_80 = arith.constant 0 : index
      %c0_81 = arith.constant 0 : index
      %c0_82 = arith.constant 0 : index
      %105 = vector.load %arg2[%c0_79, %c0_80, %c0_81, %c0_82] : memref<1x16x16x8xf32, #tpu.memory_space<vmem>>, vector<1x9x16x8xf32>
      %106 = vector.shape_cast %105 : vector<1x9x16x8xf32> to vector<9x16x8xf32>
      %107 = vector.shape_cast %106 : vector<9x16x8xf32> to vector<144x8xf32>
      %108 = arith.truncf %107 : vector<144x8xf32> to vector<144x8xbf16>
      %c0_83 = arith.constant 0 : index
      %c0_84 = arith.constant 0 : index
      %109 = vector.load %arg3[%c0_83, %c0_84] : memref<8x16xbf16, #tpu.memory_space<vmem>>, vector<8x16xbf16>
      %cst_85 = arith.constant dense<0.000000e+00> : vector<144x16xf32>
      %110 = tpu.matmul %108, %109, %cst_85 {dimension_numbers = #tpu.dot_dimension_numbers<[1], [0], [0], [1], [0, 0, 1, 1], [], []>} : vector<144x8xbf16>, vector<8x16xbf16>, vector<144x16xf32> -> vector<144x16xf32>
      %c0_86 = arith.constant 0 : index
      %c0_87 = arith.constant 0 : index
      %111 = vector.load %arg4[%c0_86, %c0_87] : memref<1x16xf32, #tpu.memory_space<vmem>>, vector<1x16xf32>
      %112 = vector.broadcast %111 : vector<1x16xf32> to vector<144x16xf32>
      %113 = arith.mulf %110, %112 : vector<144x16xf32>
      %c0_88 = arith.constant 0 : index
      %c0_89 = arith.constant 0 : index
      %114 = vector.load %arg5[%c0_88, %c0_89] : memref<1x16xf32, #tpu.memory_space<vmem>>, vector<1x16xf32>
      %115 = vector.broadcast %114 : vector<1x16xf32> to vector<144x16xf32>
      %116 = arith.addf %113, %115 : vector<144x16xf32>
      %cst_90 = arith.constant 0.000000e+00 : f32
      %cst_91 = arith.constant 6.000000e+00 : f32
      %117 = vector.broadcast %cst_90 : f32 to vector<144x16xf32>
      %118 = arith.maximumf %117, %116 : vector<144x16xf32>
      %119 = vector.broadcast %cst_91 : f32 to vector<144x16xf32>
      %120 = arith.minimumf %119, %118 : vector<144x16xf32>
      %121 = vector.shape_cast %120 : vector<144x16xf32> to vector<9x16x16xf32>
      %c1_92 = arith.constant 1 : index
      %c1_93 = arith.constant 1 : index
      %c0_94 = arith.constant 0 : index
      %122 = vector.load %arg13[%c1_92, %c1_93, %c0_94] : memref<10x18x16xf32, #tpu.memory_space<vmem>>, vector<9x16x16xf32>
      tpu.vector_store %arg13[%c1_92, %c1_93, %c0_94], %121 {strides = array<i32>} : memref<10x18x16xf32, #tpu.memory_space<vmem>>, vector<9x16x16xf32>,
      %c0_95 = arith.constant 0 : index
      %c0_96 = arith.constant 0 : index
      %c0_97 = arith.constant 0 : index
      %123 = vector.load %arg13[%c0_95, %c0_96, %c0_97] : memref<10x18x16xf32, #tpu.memory_space<vmem>>, vector<1x18x16xf32>
      tpu.vector_store %arg13[%c0_95, %c0_96, %c0_97], %3 {strides = array<i32>} : memref<10x18x16xf32, #tpu.memory_space<vmem>>, vector<1x18x16xf32>,
    } else {
    }
    %c1_i32 = arith.constant 1 : i32
    %7 = arith.cmpi eq, %arg1, %c1_i32 : i32
    %8 = arith.extui %7 : i1 to i32
    %c0_i32_6 = arith.constant 0 : i32
    %9 = arith.cmpi ne, %8, %c0_i32_6 : i32
    scf.if %9 {
      %c0_79 = arith.constant 0 : index
      %c7 = arith.constant 7 : index
      %c0_80 = arith.constant 0 : index
      %c0_81 = arith.constant 0 : index
      %105 = vector.load %arg2[%c0_79, %c7, %c0_80, %c0_81] : memref<1x16x16x8xf32, #tpu.memory_space<vmem>>, vector<1x9x16x8xf32>
      %106 = vector.shape_cast %105 : vector<1x9x16x8xf32> to vector<9x16x8xf32>
      %107 = vector.shape_cast %106 : vector<9x16x8xf32> to vector<144x8xf32>
      %108 = arith.truncf %107 : vector<144x8xf32> to vector<144x8xbf16>
      %c0_82 = arith.constant 0 : index
      %c0_83 = arith.constant 0 : index
      %109 = vector.load %arg3[%c0_82, %c0_83] : memref<8x16xbf16, #tpu.memory_space<vmem>>, vector<8x16xbf16>
      %cst_84 = arith.constant dense<0.000000e+00> : vector<144x16xf32>
      %110 = tpu.matmul %108, %109, %cst_84 {dimension_numbers = #tpu.dot_dimension_numbers<[1], [0], [0], [1], [0, 0, 1, 1], [], []>} : vector<144x8xbf16>, vector<8x16xbf16>, vector<144x16xf32> -> vector<144x16xf32>
      %c0_85 = arith.constant 0 : index
      %c0_86 = arith.constant 0 : index
      %111 = vector.load %arg4[%c0_85, %c0_86] : memref<1x16xf32, #tpu.memory_space<vmem>>, vector<1x16xf32>
      %112 = vector.broadcast %111 : vector<1x16xf32> to vector<144x16xf32>
      %113 = arith.mulf %110, %112 : vector<144x16xf32>
      %c0_87 = arith.constant 0 : index
      %c0_88 = arith.constant 0 : index
      %114 = vector.load %arg5[%c0_87, %c0_88] : memref<1x16xf32, #tpu.memory_space<vmem>>, vector<1x16xf32>
      %115 = vector.broadcast %114 : vector<1x16xf32> to vector<144x16xf32>
      %116 = arith.addf %113, %115 : vector<144x16xf32>
      %cst_89 = arith.constant 0.000000e+00 : f32
      %cst_90 = arith.constant 6.000000e+00 : f32
      %117 = vector.broadcast %cst_89 : f32 to vector<144x16xf32>
      %118 = arith.maximumf %117, %116 : vector<144x16xf32>
      %119 = vector.broadcast %cst_90 : f32 to vector<144x16xf32>
      %120 = arith.minimumf %119, %118 : vector<144x16xf32>
      %121 = vector.shape_cast %120 : vector<144x16xf32> to vector<9x16x16xf32>
      %c0_91 = arith.constant 0 : index
      %c1_92 = arith.constant 1 : index
      %c0_93 = arith.constant 0 : index
      %122 = vector.load %arg13[%c0_91, %c1_92, %c0_93] : memref<10x18x16xf32, #tpu.memory_space<vmem>>, vector<9x16x16xf32>
      tpu.vector_store %arg13[%c0_91, %c1_92, %c0_93], %121 {strides = array<i32>} : memref<10x18x16xf32, #tpu.memory_space<vmem>>, vector<9x16x16xf32>,
      %c9 = arith.constant 9 : index
      %c0_94 = arith.constant 0 : index
      %c0_95 = arith.constant 0 : index
      %123 = vector.load %arg13[%c9, %c0_94, %c0_95] : memref<10x18x16xf32, #tpu.memory_space<vmem>>, vector<1x18x16xf32>
      tpu.vector_store %arg13[%c9, %c0_94, %c0_95], %3 {strides = array<i32>} : memref<10x18x16xf32, #tpu.memory_space<vmem>>, vector<1x18x16xf32>,
    } else {
    }
    %cst_7 = arith.constant 0.000000e+00 : f32
    %10 = vector.broadcast %cst_7 : f32 to vector<8x16x16xf32>
    %c0_8 = arith.constant 0 : index
    %c0_9 = arith.constant 0 : index
    %c0_10 = arith.constant 0 : index
    %11 = vector.load %arg13[%c0_8, %c0_9, %c0_10] : memref<10x18x16xf32, #tpu.memory_space<vmem>>, vector<8x16x16xf32>
    %c0_11 = arith.constant 0 : index
    %c0_12 = arith.constant 0 : index
    %c0_13 = arith.constant 0 : index
    %12 = vector.load %arg6[%c0_11, %c0_12, %c0_13] : memref<3x3x16xf32, #tpu.memory_space<vmem>>, vector<1x1x16xf32>
    %13 = vector.shape_cast %12 : vector<1x1x16xf32> to vector<16xf32>
    %14 = vector.shape_cast %13 : vector<16xf32> to vector<1x1x16xf32>
    %15 = vector.broadcast %14 : vector<1x1x16xf32> to vector<8x16x16xf32>
    %16 = arith.mulf %11, %15 : vector<8x16x16xf32>
    %17 = arith.addf %10, %16 : vector<8x16x16xf32>
    %c0_14 = arith.constant 0 : index
    %c1 = arith.constant 1 : index
    %c0_15 = arith.constant 0 : index
    %18 = vector.load %arg13[%c0_14, %c1, %c0_15] : memref<10x18x16xf32, #tpu.memory_space<vmem>>, vector<8x16x16xf32>
    %c0_16 = arith.constant 0 : index
    %c1_17 = arith.constant 1 : index
    %c0_18 = arith.constant 0 : index
    %19 = vector.load %arg6[%c0_16, %c1_17, %c0_18] : memref<3x3x16xf32, #tpu.memory_space<vmem>>, vector<1x1x16xf32>
    %20 = vector.shape_cast %19 : vector<1x1x16xf32> to vector<16xf32>
    %21 = vector.shape_cast %20 : vector<16xf32> to vector<1x1x16xf32>
    %22 = vector.broadcast %21 : vector<1x1x16xf32> to vector<8x16x16xf32>
    %23 = arith.mulf %18, %22 : vector<8x16x16xf32>
    %24 = arith.addf %17, %23 : vector<8x16x16xf32>
    %c0_19 = arith.constant 0 : index
    %c2 = arith.constant 2 : index
    %c0_20 = arith.constant 0 : index
    %25 = vector.load %arg13[%c0_19, %c2, %c0_20] : memref<10x18x16xf32, #tpu.memory_space<vmem>>, vector<8x16x16xf32>
    %c0_21 = arith.constant 0 : index
    %c2_22 = arith.constant 2 : index
    %c0_23 = arith.constant 0 : index
    %26 = vector.load %arg6[%c0_21, %c2_22, %c0_23] : memref<3x3x16xf32, #tpu.memory_space<vmem>>, vector<1x1x16xf32>
    %27 = vector.shape_cast %26 : vector<1x1x16xf32> to vector<16xf32>
    %28 = vector.shape_cast %27 : vector<16xf32> to vector<1x1x16xf32>
    %29 = vector.broadcast %28 : vector<1x1x16xf32> to vector<8x16x16xf32>
    %30 = arith.mulf %25, %29 : vector<8x16x16xf32>
    %31 = arith.addf %24, %30 : vector<8x16x16xf32>
    %c1_24 = arith.constant 1 : index
    %c0_25 = arith.constant 0 : index
    %c0_26 = arith.constant 0 : index
    %32 = vector.load %arg13[%c1_24, %c0_25, %c0_26] : memref<10x18x16xf32, #tpu.memory_space<vmem>>, vector<8x16x16xf32>
    %c1_27 = arith.constant 1 : index
    %c0_28 = arith.constant 0 : index
    %c0_29 = arith.constant 0 : index
    %33 = vector.load %arg6[%c1_27, %c0_28, %c0_29] : memref<3x3x16xf32, #tpu.memory_space<vmem>>, vector<1x1x16xf32>
    %34 = vector.shape_cast %33 : vector<1x1x16xf32> to vector<16xf32>
    %35 = vector.shape_cast %34 : vector<16xf32> to vector<1x1x16xf32>
    %36 = vector.broadcast %35 : vector<1x1x16xf32> to vector<8x16x16xf32>
    %37 = arith.mulf %32, %36 : vector<8x16x16xf32>
    %38 = arith.addf %31, %37 : vector<8x16x16xf32>
    %c1_30 = arith.constant 1 : index
    %c1_31 = arith.constant 1 : index
    %c0_32 = arith.constant 0 : index
    %39 = vector.load %arg13[%c1_30, %c1_31, %c0_32] : memref<10x18x16xf32, #tpu.memory_space<vmem>>, vector<8x16x16xf32>
    %c1_33 = arith.constant 1 : index
    %c1_34 = arith.constant 1 : index
    %c0_35 = arith.constant 0 : index
    %40 = vector.load %arg6[%c1_33, %c1_34, %c0_35] : memref<3x3x16xf32, #tpu.memory_space<vmem>>, vector<1x1x16xf32>
    %41 = vector.shape_cast %40 : vector<1x1x16xf32> to vector<16xf32>
    %42 = vector.shape_cast %41 : vector<16xf32> to vector<1x1x16xf32>
    %43 = vector.broadcast %42 : vector<1x1x16xf32> to vector<8x16x16xf32>
    %44 = arith.mulf %39, %43 : vector<8x16x16xf32>
    %45 = arith.addf %38, %44 : vector<8x16x16xf32>
    %c1_36 = arith.constant 1 : index
    %c2_37 = arith.constant 2 : index
    %c0_38 = arith.constant 0 : index
    %46 = vector.load %arg13[%c1_36, %c2_37, %c0_38] : memref<10x18x16xf32, #tpu.memory_space<vmem>>, vector<8x16x16xf32>
    %c1_39 = arith.constant 1 : index
    %c2_40 = arith.constant 2 : index
    %c0_41 = arith.constant 0 : index
    %47 = vector.load %arg6[%c1_39, %c2_40, %c0_41] : memref<3x3x16xf32, #tpu.memory_space<vmem>>, vector<1x1x16xf32>
    %48 = vector.shape_cast %47 : vector<1x1x16xf32> to vector<16xf32>
    %49 = vector.shape_cast %48 : vector<16xf32> to vector<1x1x16xf32>
    %50 = vector.broadcast %49 : vector<1x1x16xf32> to vector<8x16x16xf32>
    %51 = arith.mulf %46, %50 : vector<8x16x16xf32>
    %52 = arith.addf %45, %51 : vector<8x16x16xf32>
    %c2_42 = arith.constant 2 : index
    %c0_43 = arith.constant 0 : index
    %c0_44 = arith.constant 0 : index
    %53 = vector.load %arg13[%c2_42, %c0_43, %c0_44] : memref<10x18x16xf32, #tpu.memory_space<vmem>>, vector<8x16x16xf32>
    %c2_45 = arith.constant 2 : index
    %c0_46 = arith.constant 0 : index
    %c0_47 = arith.constant 0 : index
    %54 = vector.load %arg6[%c2_45, %c0_46, %c0_47] : memref<3x3x16xf32, #tpu.memory_space<vmem>>, vector<1x1x16xf32>
    %55 = vector.shape_cast %54 : vector<1x1x16xf32> to vector<16xf32>
    %56 = vector.shape_cast %55 : vector<16xf32> to vector<1x1x16xf32>
    %57 = vector.broadcast %56 : vector<1x1x16xf32> to vector<8x16x16xf32>
    %58 = arith.mulf %53, %57 : vector<8x16x16xf32>
    %59 = arith.addf %52, %58 : vector<8x16x16xf32>
    %c2_48 = arith.constant 2 : index
    %c1_49 = arith.constant 1 : index
    %c0_50 = arith.constant 0 : index
    %60 = vector.load %arg13[%c2_48, %c1_49, %c0_50] : memref<10x18x16xf32, #tpu.memory_space<vmem>>, vector<8x16x16xf32>
    %c2_51 = arith.constant 2 : index
    %c1_52 = arith.constant 1 : index
    %c0_53 = arith.constant 0 : index
    %61 = vector.load %arg6[%c2_51, %c1_52, %c0_53] : memref<3x3x16xf32, #tpu.memory_space<vmem>>, vector<1x1x16xf32>
    %62 = vector.shape_cast %61 : vector<1x1x16xf32> to vector<16xf32>
    %63 = vector.shape_cast %62 : vector<16xf32> to vector<1x1x16xf32>
    %64 = vector.broadcast %63 : vector<1x1x16xf32> to vector<8x16x16xf32>
    %65 = arith.mulf %60, %64 : vector<8x16x16xf32>
    %66 = arith.addf %59, %65 : vector<8x16x16xf32>
    %c2_54 = arith.constant 2 : index
    %c2_55 = arith.constant 2 : index
    %c0_56 = arith.constant 0 : index
    %67 = vector.load %arg13[%c2_54, %c2_55, %c0_56] : memref<10x18x16xf32, #tpu.memory_space<vmem>>, vector<8x16x16xf32>
    %c2_57 = arith.constant 2 : index
    %c2_58 = arith.constant 2 : index
    %c0_59 = arith.constant 0 : index
    %68 = vector.load %arg6[%c2_57, %c2_58, %c0_59] : memref<3x3x16xf32, #tpu.memory_space<vmem>>, vector<1x1x16xf32>
    %69 = vector.shape_cast %68 : vector<1x1x16xf32> to vector<16xf32>
    %70 = vector.shape_cast %69 : vector<16xf32> to vector<1x1x16xf32>
    %71 = vector.broadcast %70 : vector<1x1x16xf32> to vector<8x16x16xf32>
    %72 = arith.mulf %67, %71 : vector<8x16x16xf32>
    %73 = arith.addf %66, %72 : vector<8x16x16xf32>
    %c0_60 = arith.constant 0 : index
    %c0_61 = arith.constant 0 : index
    %74 = vector.load %arg7[%c0_60, %c0_61] : memref<1x16xf32, #tpu.memory_space<vmem>>, vector<1x16xf32>
    %75 = vector.shape_cast %74 : vector<1x16xf32> to vector<1x1x16xf32>
    %76 = vector.broadcast %75 : vector<1x1x16xf32> to vector<8x16x16xf32>
    %77 = arith.mulf %73, %76 : vector<8x16x16xf32>
    %c0_62 = arith.constant 0 : index
    %c0_63 = arith.constant 0 : index
    %78 = vector.load %arg8[%c0_62, %c0_63] : memref<1x16xf32, #tpu.memory_space<vmem>>, vector<1x16xf32>
    %79 = vector.shape_cast %78 : vector<1x16xf32> to vector<1x1x16xf32>
    %80 = vector.broadcast %79 : vector<1x1x16xf32> to vector<8x16x16xf32>
    %81 = arith.addf %77, %80 : vector<8x16x16xf32>
    %cst_64 = arith.constant 0.000000e+00 : f32
    %cst_65 = arith.constant 6.000000e+00 : f32
    %82 = vector.broadcast %cst_64 : f32 to vector<8x16x16xf32>
    %83 = arith.maximumf %82, %81 : vector<8x16x16xf32>
    %84 = vector.broadcast %cst_65 : f32 to vector<8x16x16xf32>
    %85 = arith.minimumf %84, %83 : vector<8x16x16xf32>
    %86 = vector.shape_cast %85 : vector<8x16x16xf32> to vector<128x16xf32>
    %87 = arith.truncf %86 : vector<128x16xf32> to vector<128x16xbf16>
    %c0_66 = arith.constant 0 : index
    %c0_67 = arith.constant 0 : index
    %88 = vector.load %arg9[%c0_66, %c0_67] : memref<16x8xbf16, #tpu.memory_space<vmem>>, vector<16x8xbf16>
    %cst_68 = arith.constant dense<0.000000e+00> : vector<128x8xf32>
    %89 = tpu.matmul %87, %88, %cst_68 {dimension_numbers = #tpu.dot_dimension_numbers<[1], [0], [0], [1], [0, 0, 1, 1], [], []>} : vector<128x16xbf16>, vector<16x8xbf16>, vector<128x8xf32> -> vector<128x8xf32>
    %c0_69 = arith.constant 0 : index
    %c0_70 = arith.constant 0 : index
    %90 = vector.load %arg10[%c0_69, %c0_70] : memref<1x8xf32, #tpu.memory_space<vmem>>, vector<1x8xf32>
    %91 = vector.broadcast %90 : vector<1x8xf32> to vector<128x8xf32>
    %92 = arith.mulf %89, %91 : vector<128x8xf32>
    %c0_71 = arith.constant 0 : index
    %c0_72 = arith.constant 0 : index
    %93 = vector.load %arg11[%c0_71, %c0_72] : memref<1x8xf32, #tpu.memory_space<vmem>>, vector<1x8xf32>
    %94 = vector.broadcast %93 : vector<1x8xf32> to vector<128x8xf32>
    %95 = arith.addf %92, %94 : vector<128x8xf32>
    %c8_i32 = arith.constant 8 : i32
    %96 = arith.muli %arg1, %c8_i32 : i32
    %97 = tpu.assume_multiple %96, 8 : i32
    %c0_73 = arith.constant 0 : index
    %98 = arith.index_cast %97 : i32 to index
    %c0_74 = arith.constant 0 : index
    %c0_75 = arith.constant 0 : index
    %99 = vector.load %arg2[%c0_73, %98, %c0_74, %c0_75] : memref<1x16x16x8xf32, #tpu.memory_space<vmem>>, vector<1x8x16x8xf32>
    %100 = vector.shape_cast %99 : vector<1x8x16x8xf32> to vector<8x16x8xf32>
    %101 = vector.shape_cast %100 : vector<8x16x8xf32> to vector<128x8xf32>
    %102 = arith.addf %95, %101 : vector<128x8xf32>
    %103 = vector.shape_cast %102 : vector<128x8xf32> to vector<1x128x8xf32>
    %c0_76 = arith.constant 0 : index
    %c0_77 = arith.constant 0 : index
    %c0_78 = arith.constant 0 : index
    %104 = vector.load %arg12[%c0_76, %c0_77, %c0_78] : memref<1x128x8xf32, #tpu.memory_space<vmem>>, vector<1x128x8xf32>
    tpu.vector_store %arg12[%c0_76, %c0_77, %c0_78], %103 {strides = array<i32>} : memref<1x128x8xf32, #tpu.memory_space<vmem>>, vector<1x128x8xf32>,
    return
  }
  func.func @transform_0(%arg0: i32, %arg1: i32) -> (i32, i32, i32, i32) {
    %c0_i32 = arith.constant 0 : i32
    %c0_i32_0 = arith.constant 0 : i32
    %c0_i32_1 = arith.constant 0 : i32
    %c0_i32_2 = arith.constant 0 : i32
    return %arg0, %c0_i32, %c0_i32_0, %c0_i32_1 : i32, i32, i32, i32
  }
  func.func @transform_1(%arg0: i32, %arg1: i32) -> (i32, i32) {
    %c0_i32 = arith.constant 0 : i32
    %c0_i32_0 = arith.constant 0 : i32
    %c0_i32_1 = arith.constant 0 : i32
    return %c0_i32, %c0_i32_0 : i32, i32
  }
  func.func @transform_2(%arg0: i32, %arg1: i32) -> (i32, i32) {
    %c0_i32 = arith.constant 0 : i32
    %c0_i32_0 = arith.constant 0 : i32
    %c0_i32_1 = arith.constant 0 : i32
    return %c0_i32, %c0_i32_0 : i32, i32
  }
  func.func @transform_3(%arg0: i32, %arg1: i32) -> (i32, i32) {
    %c0_i32 = arith.constant 0 : i32
    %c0_i32_0 = arith.constant 0 : i32
    %c0_i32_1 = arith.constant 0 : i32
    return %c0_i32, %c0_i32_0 : i32, i32
  }
  func.func @transform_4(%arg0: i32, %arg1: i32) -> (i32, i32, i32) {
    %c0_i32 = arith.constant 0 : i32
    %c0_i32_0 = arith.constant 0 : i32
    %c0_i32_1 = arith.constant 0 : i32
    %c0_i32_2 = arith.constant 0 : i32
    return %c0_i32, %c0_i32_0, %c0_i32_1 : i32, i32, i32
  }
  func.func @transform_5(%arg0: i32, %arg1: i32) -> (i32, i32) {
    %c0_i32 = arith.constant 0 : i32
    %c0_i32_0 = arith.constant 0 : i32
    %c0_i32_1 = arith.constant 0 : i32
    return %c0_i32, %c0_i32_0 : i32, i32
  }
  func.func @transform_6(%arg0: i32, %arg1: i32) -> (i32, i32) {
    %c0_i32 = arith.constant 0 : i32
    %c0_i32_0 = arith.constant 0 : i32
    %c0_i32_1 = arith.constant 0 : i32
    return %c0_i32, %c0_i32_0 : i32, i32
  }
  func.func @transform_7(%arg0: i32, %arg1: i32) -> (i32, i32) {
    %c0_i32 = arith.constant 0 : i32
    %c0_i32_0 = arith.constant 0 : i32
    %c0_i32_1 = arith.constant 0 : i32
    return %c0_i32, %c0_i32_0 : i32, i32
  }
  func.func @transform_8(%arg0: i32, %arg1: i32) -> (i32, i32) {
    %c0_i32 = arith.constant 0 : i32
    %c0_i32_0 = arith.constant 0 : i32
    %c0_i32_1 = arith.constant 0 : i32
    return %c0_i32, %c0_i32_0 : i32, i32
  }
  func.func @transform_9(%arg0: i32, %arg1: i32) -> (i32, i32) {
    %c0_i32 = arith.constant 0 : i32
    %c0_i32_0 = arith.constant 0 : i32
    %c0_i32_1 = arith.constant 0 : i32
    return %c0_i32, %c0_i32_0 : i32, i32
  }
  func.func @transform_10(%arg0: i32, %arg1: i32) -> (i32, i32, i32) {
    %c0_i32 = arith.constant 0 : i32
    %c0_i32_0 = arith.constant 0 : i32
    return %arg0, %arg1, %c0_i32 : i32, i32, i32
  }
}

</mosaic_0001>

<bundles_post_ra>
// kernel: inverted_residual.1
= control target key start
LH: loop header
LB: loop body
LE: loop exit
PB: predicated region body
PF: predicated region fallthrough
CT: control target
= control target key end

     0   :  { %s4194_s0 = inlined_call_operand.hbm [shape: f32[2,16,16,8], index: 0, kind: input, shape index: {}]   ;;  %s4195_s1 = inlined_call_operand.hbm [shape: bf16[8,16], index: 1, kind: input, shape index: {}]   ;;  %s4196_s2 = inlined_call_operand.hbm [shape: f32[1,16], index: 2, kind: input, shape index: {}]   ;;  %s4197_s3 = inlined_call_operand.hbm [shape: f32[1,16], index: 3, kind: input, shape index: {}]   ;;  %s4198_s4 = inlined_call_operand.hbm [shape: f32[3,3,16], index: 4, kind: input, shape index: {}]   ;;  %s4199_s5 = inlined_call_operand.hbm [shape: f32[1,16], index: 5, kind: input, shape index: {}]   ;;  %s4200_s6 = inlined_call_operand.hbm [shape: f32[1,16], index: 6, kind: input, shape index: {}]   ;;  %s4201_s7 = inlined_call_operand.hbm [shape: bf16[16,8], index: 7, kind: input, shape index: {}]   ;;  %s4202_s8 = inlined_call_operand.hbm [shape: f32[1,8], index: 8, kind: input, shape index: {}]   ;;  %s4203_s9 = inlined_call_operand.hbm [shape: f32[1,8], index: 9, kind: input, shape index: {}]   ;;  %s4204_s10 = inlined_call_operand.hbm [shape: f32[2,256,8], index: 10, kind: output, shape index: {}]  }
   0x1   :  { %4223 = sst [smem:[#allocation37_spill]] %s4194_s0 }
   0x2   :  { %4224 = sst [smem:[#allocation38_spill]] %s4195_s1 }
   0x3   :  { %4225 = sst [smem:[#allocation39_spill]] %s4196_s2 }
   0x4   :  { %4226 = sst [smem:[#allocation40_spill]] %s4197_s3 }
   0x5   :  { %4227 = sst [smem:[#allocation41_spill]] %s4198_s4 }
   0x6   :  { %4228 = sst [smem:[#allocation42_spill]] %s4199_s5 }
   0x7   :  { %4229 = sst [smem:[#allocation43_spill]] %s4200_s6 }
   0x8   :  { %4230 = sst [smem:[#allocation44_spill]] %s4204_s10 }
   0x9   :  { %15 = vsyncpa [#allocation4], 0 }
   0xa   :  { %17 = vsyncpa [#allocation4 + $0x1], 0 }
   0xb   :  { %18 = vsyncpa [#allocation7], 0 }
   0xc   :  { %19 = vsyncpa [#allocation10], 0 }
   0xd   :  { %20 = vsyncpa [#allocation13], 0 }
   0xe   :  { %21 = vsyncpa [#allocation16], 0 }
   0xf   :  { %22 = vsyncpa [#allocation19], 0 }
  0x10   :  { %23 = vsyncpa [#allocation5], 0 }
  0x11   :  { %25 = vsyncpa [#allocation5 + $0x1], 0  ;;  %s3016_s13 = smov 0   ;;  %s3018_s14 = smov 0  }
  0x12   :  { %s3020_s15 = smov 0   ;;  %s3022_s16 = smov 0  }
  0x13   :  { %s3024_s17 = smov 0   ;;  %s3026_s18 = smov 0  }
  0x14   :  { %s3028_s19 = smov 0   ;;  %s3030_s20 = smov 0  }
  0x15   :  { %s3032_s21 = smov 0   ;;  %s3034_s22 = smov 0  }
  0x16   :  { %s3036_s23 = smov 0  }
  0x17 LB: > { %4231 = sst [smem:[#allocation28_spill]] %s2897_s13  ;;  %s4205_s24 = sadd.s32 4294967295, %s2937_s23   ;;  %s2937_s23 = sphi %s3036_s23, %s31_s23   ;;  %s2933_s22 = sphi %s3034_s22, %s4289_s22   ;;  %s2929_s21 = sphi %s3032_s21, %s4288_s21   ;;  %s2925_s20 = sphi %s3030_s20, %s4287_s20   ;;  %s2921_s19 = sphi %s3028_s19, %s4286_s19   ;;  %s2917_s18 = sphi %s3026_s18, %s4285_s18   ;;  %s2913_s17 = sphi %s3024_s17, %s4284_s17   ;;  %s2909_s16 = sphi %s3022_s16, %s4283_s16   ;;  %s2905_s15 = sphi %s3020_s15, %s4282_s15   ;;  %s2901_s14 = sphi %s3018_s14, %s4281_s14   ;;  %s2897_s13 = sphi %s3016_s13, %s4280_s13  }
  0x18   : > { %4232 = sst [smem:[#allocation29_spill]] %s2901_s14  ;;  %p2079_p0 = scmp.ge.s32.totalorder %s2937_s23, 1 }
  0x19   : > { %4233 = sst [smem:[#allocation30_spill]] %s2921_s19  ;;  %p3075_p1 = scmp.eq.s32.totalorder %s4205_s24, 0 }
  0x1a   : > { %4234 = sst [smem:[#allocation31_spill]] %s2925_s20  ;;  %p291_p2 = scmp.lt.s32.totalorder %s2937_s23, 5 }
  0x1b   : > { %s4235_s25 = scalar_select %p3075_p1, 1, 0 }
  0x1c   : > { %p3080_p3 = pnand %p2079_p0, %p291_p2  ;;  %s2939_s27 = smov [#allocation6]  }
  0x1d   : > { %s304_s28 = sshll.u32 %s2939_s27, 4  ;;  %s2940_s29 = smov [#allocation9]   ;;  %s305_s28 = int_to_ptr.vmem [resolvable:$true] %s304_s28 }
  0x1e   : > { %s4236_s26 = scalar_select %p3080_p3, 1, 0 }
  0x1f   : > { %p2348_p4 = pneg %p3080_p3  ;;  %s326_s30 = sshll.u32 %s2940_s29, 4  ;;  %s3092_s30 = int_to_ptr.vmem [resolvable:$true] %s326_s30 }
  0x20   : > { %4237 = sst [smem:[#allocation32_spill]] %s4236_s26  ;;  %s2941_s12 = smov [#allocation12]  }
  0x21   : > { %p3088_p5 = pnand %p2348_p4, %p3075_p1  ;;  %s350_s24 = sshll.u32 %s2941_s12, 4  ;;  %s3094_s24 = int_to_ptr.vmem [resolvable:$true] %s350_s24 }
  0x22   : > { %s4239_s1 = sld [smem:[#allocation38_spill]] }
  0x23   : > { %p3104_p7 = pneg %p3088_p5 }
  0x28   : > { %s2513_s27 = scalar_lea.hbm %s4239_s1, 64 }
  0x29   : > { %p2514_p6 = scmp.ne.s32.totalorder %s4239_s1, %s2513_s27  ;;  %p2520_p10 = scmp.lt.u32.totalorder %s2513_s27, %s4239_s1 }
  0x2b   : > { %p2516_p8 = pnand %p3104_p7, %p2514_p6 }
  0x2d   : > { %p2517_p9 = pneg %p2516_p8 }
  0x2f   : > { %p2522_p11 = pnand %p2520_p10, %p2517_p9 }
  0x31   : > { %2525 = shalt.err (!%p2522_p11)
}
  0x32   : > { %s2526_s10 = scalar_lea.vmem %s305_s28, 64  ;;  %p2534_p2 = scmp.lt.s32.totalorder %s305_s28, %s305_s28 }
  0x33   : > { %p2527_p12 = scmp.ne.s32.totalorder %s305_s28, %s2526_s10  ;;  %p2535_p4 = scmp.lt.s32.totalorder %s2526_s10, %s2526_s10 }
  0x35   : > { %p2529_p13 = pnand %p2527_p12, %p3104_p7  ;;  %p2536_p3 = por %p2535_p4, %p2534_p2 }
  0x37   : > { %p2530_p0 = pneg %p2529_p13 }
  0x39   : > { %p2537_p1 = pnand %p2536_p3, %p2530_p0 }
  0x3b   : > { %2540 = shalt.err (!%p2537_p1)
}
  0x3c   : > { %2351 = dma.hbm_to_vmem [thread:$0]  (!%p3088_p5), %s4239_s1, 64, %s305_s28, [#allocation7]  }
  0x3d   : > { %s4241_s3 = sld [smem:[#allocation40_spill]] }
  0x43   : > { %s2541_s27 = scalar_lea.hbm %s4241_s3, 16 }
  0x44   : > { %p2542_p6 = scmp.ne.s32.totalorder %s4241_s3, %s2541_s27  ;;  %p2548_p1 = scmp.lt.u32.totalorder %s2541_s27, %s4241_s3 }
  0x46   : > { %p2544_p8 = pnand %p2542_p6, %p3104_p7 }
  0x48   : > { %p2545_p9 = pneg %p2544_p8 }
  0x4a   : > { %p2550_p3 = pnand %p2548_p1, %p2545_p9 }
  0x4c   : > { %2553 = shalt.err (!%p2550_p3)
}
  0x4d   : > { %s2554_s28 = scalar_lea.vmem %s3092_s30, 16  ;;  %s2561_s13 = scalar_lea.vmem %s3092_s30, 32 }
  0x4e   : > { %p2555_p10 = scmp.ne.s32.totalorder %s3092_s30, %s2554_s28  ;;  %p2562_p13 = scmp.lt.s32.totalorder %s3092_s30, %s3092_s30 }
  0x4f   : > { %p2563_p0 = scmp.lt.s32.totalorder %s2561_s13, %s2554_s28 }
  0x50   : > { %p2557_p11 = pnand %p2555_p10, %p3104_p7 }
  0x51   : > { %p2564_p2 = por %p2563_p0, %p2562_p13 }
  0x52   : > { %p2558_p12 = pneg %p2557_p11 }
  0x54   : > { %p2565_p4 = pnand %p2564_p2, %p2558_p12 }
  0x56   : > { %2568 = shalt.err (!%p2565_p4)
}
  0x57   : > { %2357 = dma.hbm_to_vmem [thread:$0]  (!%p3088_p5), %s4241_s3, 16, %s3092_s30, [#allocation10]  }
  0x58   : > { %s4242_s5 = sld [smem:[#allocation42_spill]] }
  0x5e   : > { %s2569_s26 = scalar_lea.hbm %s4242_s5, 16 }
  0x5f   : > { %p2570_p6 = scmp.ne.s32.totalorder %s4242_s5, %s2569_s26  ;;  %p2576_p1 = scmp.lt.u32.totalorder %s2569_s26, %s4242_s5 }
  0x61   : > { %p2572_p8 = pnand %p2570_p6, %p3104_p7 }
  0x63   : > { %p2573_p9 = pneg %p2572_p8 }
  0x65   : > { %p2578_p3 = pnand %p2576_p1, %p2573_p9 }
  0x67   : > { %2581 = shalt.err (!%p2578_p3)
}
  0x68   : > { %s2582_s30 = scalar_lea.vmem %s3094_s24, 16  ;;  %s2589_s13 = scalar_lea.vmem %s3094_s24, 32 }
  0x69   : > { %p2583_p10 = scmp.ne.s32.totalorder %s3094_s24, %s2582_s30  ;;  %p2590_p13 = scmp.lt.s32.totalorder %s3094_s24, %s3094_s24 }
  0x6a   : > { %p2591_p0 = scmp.lt.s32.totalorder %s2589_s13, %s2582_s30 }
  0x6b   : > { %p2585_p11 = pnand %p2583_p10, %p3104_p7 }
  0x6c   : > { %p2592_p2 = por %p2591_p0, %p2590_p13 }
  0x6d   : > { %p2586_p12 = pneg %p2585_p11 }
  0x6f   : > { %p2593_p4 = pnand %p2592_p2, %p2586_p12 }
  0x71   : > { %2596 = shalt.err (!%p2593_p4)
}
  0x72   : > { %2363 = dma.hbm_to_vmem [thread:$0]  (!%p3088_p5), %s4242_s5, 16, %s3094_s24, [#allocation13]  }
  0x73   : > { %s2942_s20 = smov [#allocation15]   ;;  %s2943_s26 = smov [#allocation8]  }
  0x74   : > { %s371_s0 = sshll.u32 %s2942_s20, 4  ;;  %s315_s27 = sshll.u32 %s2943_s26, 4  ;;  %s372_s0 = int_to_ptr.vmem [resolvable:$true] %s371_s0  ;;  %s316_s27 = int_to_ptr.vmem [resolvable:$true] %s315_s27 }
  0x75   : > { %s2597_s28 = scalar_lea.hbm %s4201_s7, 128 }
  0x76   : > { %p2598_p6 = scmp.ne.s32.totalorder %s4201_s7, %s2597_s28  ;;  %p2604_p1 = scmp.lt.u32.totalorder %s2597_s28, %s4201_s7 }
  0x78   : > { %p2600_p8 = pnand %p2598_p6, %p3104_p7 }
  0x7a   : > { %p2601_p9 = pneg %p2600_p8 }
  0x7c   : > { %p2606_p3 = pnand %p2604_p1, %p2601_p9 }
  0x7e   : > { %2609 = shalt.err (!%p2606_p3)
}
  0x7f   : > { %s2610_s24 = scalar_lea.vmem %s372_s0, 128  ;;  %p2618_p13 = scmp.lt.s32.totalorder %s372_s0, %s372_s0 }
  0x80   : > { %p2611_p10 = scmp.ne.s32.totalorder %s372_s0, %s2610_s24  ;;  %p2619_p0 = scmp.lt.s32.totalorder %s2610_s24, %s2610_s24 }
  0x82   : > { %p2613_p11 = pnand %p2611_p10, %p3104_p7  ;;  %p2620_p2 = por %p2619_p0, %p2618_p13 }
  0x84   : > { %p2614_p12 = pneg %p2613_p11 }
  0x86   : > { %p2621_p4 = pnand %p2620_p2, %p2614_p12 }
  0x88   : > { %2624 = shalt.err (!%p2621_p4)
}
  0x89   : > { %s4215_s19 = smov 64   ;;  %s4216_s20 = smov 4  }
  0x8a   : > { %2369 = dma.hbm_to_vmem [thread:$0]  (!%p3088_p5), %s4201_s7, 128, %s372_s0, [#allocation16], %s4215_s19, %s4215_s19, %s4216_s20  }
  0x8b   : > { %s4243_s2 = sld [smem:[#allocation39_spill]] }
  0x91   : > { %s2625_s28 = scalar_lea.hbm %s4243_s2, 16 }
  0x92   : > { %p2626_p6 = scmp.ne.s32.totalorder %s4243_s2, %s2625_s28  ;;  %p2632_p1 = scmp.lt.u32.totalorder %s2625_s28, %s4243_s2 }
  0x94   : > { %p2628_p8 = pnand %p2626_p6, %p3104_p7 }
  0x96   : > { %p2629_p9 = pneg %p2628_p8 }
  0x98   : > { %p2634_p3 = pnand %p2632_p1, %p2629_p9 }
  0x9a   : > { %2637 = shalt.err (!%p2634_p3)
}
  0x9b   : > { %s2638_s1 = scalar_lea.vmem %s316_s27, 16  ;;  %s2645_s0 = scalar_lea.vmem %s316_s27, 32 }
  0x9c   : > { %p2639_p10 = scmp.ne.s32.totalorder %s316_s27, %s2638_s1  ;;  %p2646_p13 = scmp.lt.s32.totalorder %s316_s27, %s316_s27 }
  0x9d   : > { %p2647_p0 = scmp.lt.s32.totalorder %s2645_s0, %s2638_s1 }
  0x9e   : > { %p2641_p11 = pnand %p2639_p10, %p3104_p7 }
  0x9f   : > { %p2648_p2 = por %p2647_p0, %p2646_p13 }
  0xa0   : > { %p2642_p12 = pneg %p2641_p11 }
  0xa2   : > { %p2649_p4 = pnand %p2648_p2, %p2642_p12 }
  0xa4   : > { %2652 = shalt.err (!%p2649_p4)
}
  0xa5   : > { %2354 = dma.hbm_to_vmem [thread:$0]  (!%p3088_p5), %s4243_s2, 16, %s316_s27, [#allocation7]  }
  0xa6   : > { %s2946_s10 = smov [#allocation11]   ;;  %s2947_s30 = smov [#allocation14]  }
  0xa7   : > { %s336_s28 = sshll.u32 %s2946_s10, 4  ;;  %s361_s13 = sshll.u32 %s2947_s30, 4  ;;  %s337_s28 = int_to_ptr.vmem [resolvable:$true] %s336_s28  ;;  %s362_s13 = int_to_ptr.vmem [resolvable:$true] %s361_s13 }
  0xa8   : > { %s4244_s4 = sld [smem:[#allocation41_spill]] }
  0xae   : > { %s2653_s19 = scalar_lea.hbm %s4244_s4, 192 }
  0xaf   : > { %p2654_p6 = scmp.ne.s32.totalorder %s4244_s4, %s2653_s19  ;;  %p2660_p1 = scmp.lt.u32.totalorder %s2653_s19, %s4244_s4 }
  0xb1   : > { %p2656_p8 = pnand %p2654_p6, %p3104_p7 }
  0xb3   : > { %p2657_p9 = pneg %p2656_p8 }
  0xb5   : > { %p2662_p3 = pnand %p2660_p1, %p2657_p9 }
  0xb7   : > { %2665 = shalt.err (!%p2662_p3)
}
  0xb8   : > { %s2666_s27 = scalar_lea.vmem %s337_s28, 192  ;;  %p2674_p13 = scmp.lt.s32.totalorder %s337_s28, %s337_s28 }
  0xb9   : > { %p2667_p10 = scmp.ne.s32.totalorder %s337_s28, %s2666_s27  ;;  %p2675_p0 = scmp.lt.s32.totalorder %s2666_s27, %s2666_s27 }
  0xbb   : > { %p2669_p11 = pnand %p2667_p10, %p3104_p7  ;;  %p2676_p2 = por %p2675_p0, %p2674_p13 }
  0xbd   : > { %p2670_p12 = pneg %p2669_p11 }
  0xbf   : > { %p2677_p4 = pnand %p2676_p2, %p2670_p12 }
  0xc1   : > { %2680 = shalt.err (!%p2677_p4)
}
  0xc2   : > { %s4245_s12 = smov 4   ;;  %s4246_s10 = smov 64  }
  0xc3   : > { %2360 = dma.hbm_to_vmem [thread:$0]  (!%p3088_p5), %s4244_s4, 192, %s337_s28, [#allocation10], %s4246_s10, %s4246_s10, %s4245_s12  }
  0xc4   : > { %s4247_s6 = sld [smem:[#allocation43_spill]] }
  0xca   : > { %s2681_s24 = scalar_lea.hbm %s4247_s6, 16 }
  0xcb   : > { %p2682_p6 = scmp.ne.s32.totalorder %s4247_s6, %s2681_s24  ;;  %p2688_p1 = scmp.lt.u32.totalorder %s2681_s24, %s4247_s6 }
  0xcd   : > { %p2684_p8 = pnand %p2682_p6, %p3104_p7 }
  0xcf   : > { %p2685_p9 = pneg %p2684_p8 }
  0xd1   : > { %p2690_p3 = pnand %p2688_p1, %p2685_p9 }
  0xd3   : > { %2693 = shalt.err (!%p2690_p3)
}
  0xd4   : > { %s2694_s20 = scalar_lea.vmem %s362_s13, 16  ;;  %s2701_s28 = scalar_lea.vmem %s362_s13, 32 }
  0xd5   : > { %p2695_p10 = scmp.ne.s32.totalorder %s362_s13, %s2694_s20  ;;  %p2702_p13 = scmp.lt.s32.totalorder %s362_s13, %s362_s13 }
  0xd6   : > { %p2703_p0 = scmp.lt.s32.totalorder %s2701_s28, %s2694_s20 }
  0xd7   : > { %p2697_p11 = pnand %p2695_p10, %p3104_p7 }
  0xd8   : > { %p2704_p2 = por %p2703_p0, %p2702_p13 }
  0xd9   : > { %p2698_p12 = pneg %p2697_p11 }
  0xdb   : > { %p2705_p4 = pnand %p2704_p2, %p2698_p12 }
  0xdd   : > { %2708 = shalt.err (!%p2705_p4)
}
  0xde   : > { %2366 = dma.hbm_to_vmem [thread:$0]  (!%p3088_p5), %s4247_s6, 16, %s362_s13, [#allocation13]  }
  0xdf   : > { %s2948_s19 = smov [#allocation17]   ;;  %s2949_s14 = smov [#allocation18]  }
  0xe0   : > { %s385_s30 = sshll.u32 %s2948_s19, 4  ;;  %s396_s24 = sshll.u32 %s2949_s14, 4  ;;  %s386_s30 = int_to_ptr.vmem [resolvable:$true] %s385_s30  ;;  %s397_s24 = int_to_ptr.vmem [resolvable:$true] %s396_s24 }
  0xe1   : > { %s2709_s26 = scalar_lea.hbm %s4202_s8, 16 }
  0xe2   : > { %p2710_p6 = scmp.ne.s32.totalorder %s4202_s8, %s2709_s26  ;;  %p2716_p1 = scmp.lt.u32.totalorder %s2709_s26, %s4202_s8 }
  0xe4   : > { %p2712_p8 = pnand %p2710_p6, %p3104_p7 }
  0xe6   : > { %p2713_p9 = pneg %p2712_p8 }
  0xe8   : > { %p2718_p3 = pnand %p2716_p1, %p2713_p9 }
  0xea   : > { %2721 = shalt.err (!%p2718_p3)
}
  0xeb   : > { %s2722_s13 = scalar_lea.vmem %s386_s30, 16  ;;  %s2729_s10 = scalar_lea.vmem %s386_s30, 32 }
  0xec   : > { %p2723_p10 = scmp.ne.s32.totalorder %s386_s30, %s2722_s13  ;;  %p2730_p13 = scmp.lt.s32.totalorder %s386_s30, %s386_s30 }
  0xed   : > { %p2731_p0 = scmp.lt.s32.totalorder %s2729_s10, %s2722_s13 }
  0xee   : > { %p2725_p11 = pnand %p2723_p10, %p3104_p7 }
  0xef   : > { %p2732_p2 = por %p2731_p0, %p2730_p13 }
  0xf0   : > { %p2726_p12 = pneg %p2725_p11 }
  0xf2   : > { %p2733_p4 = pnand %p2732_p2, %p2726_p12 }
  0xf4   : > { %2736 = shalt.err (!%p2733_p4)
}
  0xf5   : > { %2372 = dma.hbm_to_vmem [thread:$0]  (!%p3088_p5), %s4202_s8, 16, %s386_s30, [#allocation16]  }
  0xf6   : > { %s2737_s26 = scalar_lea.hbm %s4203_s9, 16 }
  0xf7   : > { %p2738_p6 = scmp.ne.s32.totalorder %s4203_s9, %s2737_s26  ;;  %p2744_p1 = scmp.lt.u32.totalorder %s2737_s26, %s4203_s9 }
  0xf9   : > { %p2740_p8 = pnand %p2738_p6, %p3104_p7 }
  0xfb   : > { %p2741_p9 = pneg %p2740_p8 }
  0xfd   : > { %p2746_p3 = pnand %p2744_p1, %p2741_p9 }
  0xff   : > { %2749 = shalt.err (!%p2746_p3)
}
 0x100   : > { %s2750_s13 = scalar_lea.vmem %s397_s24, 16  ;;  %s2757_s30 = scalar_lea.vmem %s397_s24, 32 }
 0x101   : > { %p2751_p10 = scmp.ne.s32.totalorder %s397_s24, %s2750_s13  ;;  %p2758_p13 = scmp.lt.s32.totalorder %s397_s24, %s397_s24 }
 0x102   : > { %p2759_p0 = scmp.lt.s32.totalorder %s2757_s30, %s2750_s13 }
 0x103   : > { %p2753_p11 = pnand %p2751_p10, %p3104_p7 }
 0x104   : > { %p2760_p2 = por %p2759_p0, %p2758_p13 }
 0x105   : > { %p2754_p12 = pneg %p2753_p11 }
 0x107   : > { %p2761_p4 = pnand %p2760_p2, %p2754_p12 }
 0x109   : > { %2764 = shalt.err (!%p2761_p4)
}
 0x10a   : > { %2375 = dma.hbm_to_vmem [thread:$0]  (!%p3088_p5), %s4203_s9, 16, %s397_s24, [#allocation19]  }
 0x10b   : > { %s2078_s29 = sadd.s32 4294967294, %s2937_s23   ;;  %s4248_s14 = sld [smem:[#allocation29_spill]] }
 0x10c   : > { %s40_s11 = sadd.s32 1, %s2929_s21  ;;  %s43_s1 = sadd.s32 1, %s2933_s22 }
 0x10d   : > { %p41_p7 = scmp.ge.s32.totalorder %s40_s11, 2  ;;  %s4249_s0 = sld [smem:[#allocation28_spill]] }
 0x10e   : > { %s50_s26 = sadd.s32 1, %s2917_s18  ;;  %p57_p6 = scmp.ne.s32.totalorder %s2917_s18, %s2913_s17 }
 0x10f   : > { %p58_p8 = scmp.eq.s32.totalorder %s2937_s23, 0  ;;  %s4291_s11 = smov (%p41_p7, %s40_s11), 0 }
 0x110   : > { %s4293_s1 = smov (!%p41_p7, %s43_s1), %s2933_s22  ;;  %p63_p5 = scmp.ne.s32.totalorder %s2913_s17, %s2909_s16 }
 0x111   : > { %p3292_p9 = por %p58_p8, %p57_p6  ;;  %p45_p1 = scmp.ge.s32.totalorder %s4293_s1, 2 }
 0x112   : > { %s263_s27 = ssub.s32 %s2929_s21, %s4291_s11  ;;  %p4251_p3 = scmp.ne.s32.totalorder %s4235_s25, 0 }
 0x113   : > { %s267_s28 = sadd.s32 1, %s2905_s15  ;;  %s4295_s1 = smov (%p45_p1, %s4293_s1), 0 }
 0x114   : > { %p3302_p10 = por %p4251_p3, %p63_p5  ;;  %p277_p11 = scmp.ne.s32.totalorder %s2905_s15, %s4248_s14 }
 0x115   : > { %s4253_s12 = sadd.s32 4294967295, %s2937_s23   ;;  %s47_s13 = ssub.s32 %s2933_s22, %s4295_s1 }
 0x116   : > { %p278_p12 = scmp.eq.s32.totalorder %s4253_s12, 3  ;;  %p283_p13 = scmp.ne.s32.totalorder %s4248_s14, %s4249_s0 }
 0x117   : > { %p48_p0 = scmp.eq.s32.totalorder %s47_s13, 0  ;;  %s264_s16 = sor.u32 %s263_s27, %s47_s13 }
 0x118   : > { %p265_p2 = scmp.eq.s32.totalorder %s264_s16, 0  ;;  %p3317_p4 = por %p278_p12, %p277_p11 }
 0x119   : > { %s3322_s10 = scalar_select %p48_p0, %s2917_s18, %s50_s26  }
 0x11a   : > { %s4254_s30 = scalar_select %p3317_p4, 1, 0 }
 0x11b   : > { %s3325_s19 = scalar_select %p265_p2, %s2905_s15, %s267_s28  }
 0x11c   : > { %p284_p7 = scmp.eq.s32.totalorder %s2078_s29, 3  ;;  %p2393_p6 = scmp.lt.s32.totalorder %s2937_s23, 4 }
 0x11d   : > { %s407_s2 = sand.u32 1, %s2917_s18   ;;  %s2177_s3 = sshll.u32 %s2933_s22, 12 }
 0x11e   : > { %p3330_p8 = por %p284_p7, %p283_p13  ;;  %s2090_s14 = sshll.u32 %s407_s2, 8 }
 0x11f   : > { %s4256_s13 = sld [smem:[#allocation37_spill]]  ;;  %p3341_p5 = pnand %p2393_p6, %p3292_p9 }
 0x120   : > { %s4255_s12 = scalar_select %p3330_p8, 1, 0 }
 0x121   : > { %s411_s26 = scalar_lea.vmem [#allocation3], %s2090_s14  ;;  %s3347_s5 = scalar_lea.sflag [#allocation4], %s407_s2 }
 0x122   : > { %s418_s28 = sshll.u32 %s411_s26, 4  ;;  %p2767_p3 = pneg %p3341_p5  ;;  %s3345_s28 = int_to_ptr.vmem [resolvable:$true] %s418_s28 }
 0x125   : > { %s4257_s4 = smov %s4256_s13  ;;  %s3337_s16 = scalar_lea.hbm %s4256_s13, %s2177_s3 }
 0x126   : > { %s2765_s0 = scalar_lea.hbm %s3337_s16, 4096  ;;  %s2770_s27 = scalar_lea.hbm %s4257_s4, 8192 }
 0x127   : > { %p2766_p1 = scmp.ne.s32.totalorder %s3337_s16, %s2765_s0  ;;  %p2771_p9 = scmp.lt.u32.totalorder %s3337_s16, %s4257_s4 }
 0x128   : > { %p2772_p13 = scmp.lt.u32.totalorder %s2770_s27, %s2765_s0  ;;  %p2774_p2 = scmp.lt.u32.totalorder %s2765_s0, %s3337_s16 }
 0x129   : > { %p2768_p11 = pnand %p2767_p3, %p2766_p1 }
 0x12a   : > { %p2773_p0 = por %p2772_p13, %p2771_p9 }
 0x12b   : > { %p2769_p12 = pneg %p2768_p11 }
 0x12c   : > { %p2775_p7 = por %p2774_p2, %p2773_p0 }
 0x12e   : > { %p2776_p6 = pnand %p2775_p7, %p2769_p12 }
 0x130   : > { %2779 = shalt.err (!%p2776_p6)
}
 0x131   : > { %s2780_s2 = scalar_lea.vmem %s3345_s28, 4096  ;;  %s2950_s14 = smov [#allocation3]  }
 0x132   : > { %p2781_p1 = scmp.ne.s32.totalorder %s3345_s28, %s2780_s2  ;;  %s2785_s26 = sshll.u32 %s2950_s14, 4  ;;  %s2786_s26 = int_to_ptr.vmem [resolvable:$false] %s2785_s26 }
 0x133   : > { %s2787_s6 = scalar_lea.vmem %s2786_s26, 8192  ;;  %p2788_p4 = scmp.lt.s32.totalorder %s3345_s28, %s2786_s26 }
 0x134   : > { %p2783_p11 = pnand %p2781_p1, %p2767_p3  ;;  %p2789_p9 = scmp.lt.s32.totalorder %s2787_s6, %s2780_s2 }
 0x136   : > { %p2784_p8 = pneg %p2783_p11  ;;  %p2790_p13 = por %p2789_p9, %p2788_p4 }
 0x138   : > { %p2791_p0 = pnand %p2790_p13, %p2784_p8 }
 0x13a   : > { %2794 = shalt.err (!%p2791_p0)
}
 0x13b   : > { %s2951_s0 = smov 128   ;;  %s2952_s3 = smov 8  }
 0x13c   : > { %2379 = dma.hbm_to_vmem [thread:$0]  (!%p3341_p5), %s3337_s16, 4096, %s3345_s28, %s3347_s5, %s2951_s0, %s2951_s0, %s2952_s3  }
 0x13d   : > { %s4259_s24 = sld [smem:[#allocation32_spill]] }
 0x143   : > { %p4260_p3 = scmp.ne.s32.totalorder %s4259_s24, 0 }
 0x145   : > { %430 = sbr.rel (%p4260_p3) target bundleno = 1223 (0x4c7), region = 60 }
 0x14c   : > { %s432_s27 = sand.u32 1, %s2913_s17  }
 0x14d   : > { %s2094_s13 = sshll.u32 %s432_s27, 8  ;;  %s433_s14 = scalar_lea.sflag [#allocation4], %s432_s27 }
 0x14e   : > { %s3378_s2 = scalar_lea.vmem [#allocation3], %s2094_s13 }
 0x14f   : > { %2868 = dma.done.wait (%p3302_p10), %s433_s14, 4096  }
 0x150   : > { %2870 = vsyncadd (%p3302_p10), %s433_s14, 4294963200  ;;  %p4261_p4 = scmp.ne.s32.totalorder %s4235_s25, 0 }
 0x152   : > { %2872 = dma.done.wait (%p4261_p4), [#allocation7], 80  }
 0x153   : > { %2874 = vsyncadd (%p4261_p4), [#allocation7], 4294967216 }
 0x154   : > { %2876 = dma.done.wait (%p4261_p4), [#allocation10], 208  }
 0x155   : > { %2878 = vsyncadd (%p4261_p4), [#allocation10], 4294967088 }
 0x156   : > { %2880 = dma.done.wait (%p4261_p4), [#allocation13], 32  }
 0x157   : > { %2882 = vsyncadd (%p4261_p4), [#allocation13], 4294967264 }
 0x158   : > { %2884 = dma.done.wait (%p4261_p4), [#allocation16], 144  }
 0x159   : > { %2886 = vsyncadd (%p4261_p4), [#allocation16], 4294967152 }
 0x15a   : > { %2888 = dma.done.wait (%p4261_p4), [#allocation19], 16  }
 0x15b   : > { %2890 = vsyncadd (%p4261_p4), [#allocation19], 4294967280  ;;  %s4262_s5 = sld [smem:[#allocation29_spill]]  ;;  %vm511_vm0 = vcmask 122880   ;;  %v2953_v0 = vmov 0.0   ;;  %s4263_s29 = sld [smem:[#allocation30_spill]] }
 0x15c   : > { %512 = vst.msk [vmem:[#allocation2] sm:$0x1] %vm511_vm0, %v2953_v0  ;;  %513 = vst.msk [vmem:[#allocation2 + $0x18] sm:$0x1] %vm511_vm0, %v2953_v0 }
 0x15d   : > { %514 = vst.msk [vmem:[#allocation2 + $0x30] sm:$0x1] %vm511_vm0, %v2953_v0  ;;  %515 = vst.msk [vmem:[#allocation2 + $0x48] sm:$0x1] %vm511_vm0, %v2953_v0 }
 0x15e   : > { %516 = vst.msk [vmem:[#allocation2 + $0x60] sm:$0x1] %vm511_vm0, %v2953_v0  ;;  %517 = vst.msk [vmem:[#allocation2 + $0x78] sm:$0x1] %vm511_vm0, %v2953_v0 }
 0x15f   : > { %518 = vst.msk [vmem:[#allocation2 + $0x90] sm:$0x1] %vm511_vm0, %v2953_v0  ;;  %519 = vst.msk [vmem:[#allocation2 + $0xa8] sm:$0x1] %vm511_vm0, %v2953_v0 }
 0x160   : > { %520 = vst.msk [vmem:[#allocation2 + $0xc0] sm:$0x1] %vm511_vm0, %v2953_v0  ;;  %521 = vst.msk [vmem:[#allocation2 + $0xd8] sm:$0x1] %vm511_vm0, %v2953_v0 }
 0x161   : > { %s506_s20 = sand.u32 1, %s4262_s5   ;;  %522 = vst.msk [vmem:[#allocation2 + $0x11] sm:$0x1] %vm511_vm0, %v2953_v0  ;;  %523 = vst.msk [vmem:[#allocation2 + $0x29] sm:$0x1] %vm511_vm0, %v2953_v0  ;;  %p2105_p10 = scmp.ne.s32.totalorder %s4263_s29, 0 }
 0x162   : > { %s2104_s16 = sshll.u32 %s506_s20, 7  ;;  %524 = vst.msk [vmem:[#allocation2 + $0x41] sm:$0x1] %vm511_vm0, %v2953_v0  ;;  %525 = vst.msk [vmem:[#allocation2 + $0x59] sm:$0x1] %vm511_vm0, %v2953_v0  ;;  %vm788_vm1 = vcmask (!%p2105_p10), 130048  }
 0x163   : > { %526 = vst.msk [vmem:[#allocation2 + $0x71] sm:$0x1] %vm511_vm0, %v2953_v0  ;;  %527 = vst.msk [vmem:[#allocation2 + $0x89] sm:$0x1] %vm511_vm0, %v2953_v0  ;;  %s3427_s25 = scalar_lea.vmem [#allocation20], %s2104_s16  ;;  %535 = sbr.rel (%p2105_p10) target bundleno = 618 (0x26a), region = 104 }
 0x164   : > { %528 = vst.msk [vmem:[#allocation2 + $0xa1] sm:$0x1] %vm511_vm0, %v2953_v0  ;;  %529 = vst.msk [vmem:[#allocation2 + $0xb9] sm:$0x1] %vm511_vm0, %v2953_v0  ;;  %vm809_vm2 = vcmask (!%p2105_p10), 123904   ;;  %vm592_vm3 = vcmask (!%p2105_p10), 1043456  }
 0x165   : > { %530 = vst.msk [vmem:[#allocation2 + $0xd1] sm:$0x1] %vm511_vm0, %v2953_v0  ;;  %531 = vst.msk [vmem:[#allocation2 + $0xe9] sm:$0x1] %vm511_vm0, %v2953_v0  ;;  %v563_v1 = vld [vmem:[#allocation6] sm:$0xf] (!%p2105_p10) }
 0x166   : > { %v2954_v2 = vmov (!%p2105_p10), 0.0   ;;  %v594_v3 = vsel (!%p2105_p10), %vm592_vm3, %v563_v1, 0  ;;  %v536_v4 = vld [vmem:[%s3378_s2] sm:$0xff] (!%p2105_p10)  ;;  %v537_v5 = vld [vmem:[%s3378_s2 + $0x8] sm:$0xff] (!%p2105_p10)  ;;  %v546_v6 = vld [vmem:[%s3378_s2 + $0x50] sm:$0xff] (!%p2105_p10)  ;;  %vm2955_vm4 = vmmov (!%p2105_p10), 0  }
 0x167   : > { %2208 = vmatprep.subr.bf16.mxu0 (!%p2105_p10), %v2954_v2  ;;  %807 = vst.msk [vmem:[#allocation2] sm:$0xff] (!%p2105_p10), %vm788_vm1, %v2954_v2  ;;  %808 = vst.msk [vmem:[#allocation2 + $0x8] sm:$0xff] (!%p2105_p10), %vm788_vm1, %v2954_v2  ;;  %2302 = vmatprep.subr.bf16.mxu1 (!%p2105_p10), %v2954_v2  ;;  %v554_v7 = vpack.c.bf16 (!%p2105_p10), %v537_v5, %v536_v4  ;;  %vm564_vm5 = vcmask (!%p2105_p10), 64512   ;;  %v547_v8 = vld [vmem:[%s3378_s2 + $0x58] sm:$0xff] (!%p2105_p10)  ;;  %v538_v10 = vld [vmem:[%s3378_s2 + $0x10] sm:$0xff] (!%p2105_p10) }
 0x168   : > { %810 = vst.msk [vmem:[#allocation2 + $0x10] sm:$0x3] (!%p2105_p10), %vm809_vm2, %v2954_v2  ;;  %2209 = vmatpush3.bf16.msra.mxu0 (!%p2105_p10), %v594_v3  ;;  %2210 = vmatprep.mubr.msk.bf16.mxu0 (!%p2105_p10), %vm2955_vm4, %v2954_v2  ;;  %v559_v9 = vpack.c.bf16 (!%p2105_p10), %v547_v8, %v546_v6  ;;  %v539_v11 = vld [vmem:[%s3378_s2 + $0x18] sm:$0xff] (!%p2105_p10)  ;;  %v548_v12 = vld [vmem:[%s3378_s2 + $0x60] sm:$0xff] (!%p2105_p10)  ;;  %v549_v13 = vld [vmem:[%s3378_s2 + $0x68] sm:$0xff] (!%p2105_p10) }
 0x169   : > { %2303 = vmatpush3.bf16.msra.mxu1 (!%p2105_p10), %v594_v3  ;;  %2230 = vmatprep.mubr.msk.bf16.mxu1 (!%p2105_p10), %vm2955_vm4, %v2954_v2  ;;  %v555_v14 = vpack.c.bf16 (!%p2105_p10), %v539_v11, %v538_v10  ;;  %v560_v15 = vpack.c.bf16 (!%p2105_p10), %v549_v13, %v548_v12  ;;  %v540_v16 = vld [vmem:[%s3378_s2 + $0x20] sm:$0xff] (!%p2105_p10)  ;;  %v541_v17 = vld [vmem:[%s3378_s2 + $0x28] sm:$0xff] (!%p2105_p10)  ;;  %v550_v18 = vld [vmem:[%s3378_s2 + $0x70] sm:$0xff] (!%p2105_p10) }
 0x16a   : > { %v551_v19 = vld [vmem:[%s3378_s2 + $0x78] sm:$0xff]  ;;  %v556_v20 = vpack.c.bf16 %v541_v17, %v540_v16  ;;  %v542_v22 = vld [vmem:[%s3378_s2 + $0x30] sm:$0xff]  ;;  %v552_v24 = vld [vmem:[%s3378_s2 + $0x80] sm:$0xff] }
 0x16b   : > { %2211 = vmatmul.mubr.msk.bf16.vlgmr.msra.gmra.mrb[0].mxu0 %vm564_vm5, %v554_v7  ;;  %v561_v21 = vpack.c.bf16 %v551_v19, %v550_v18  ;;  %v543_v23 = vld [vmem:[%s3378_s2 + $0x38] sm:$0xff]  ;;  %v553_v25 = vld [vmem:[%s3378_s2 + $0x88] sm:$0xff]  ;;  %v544_v28 = vld [vmem:[%s3378_s2 + $0x40] sm:$0xff] }
 0x16c   : > { %2231 = vmatmul.mubr.msk.bf16.vlgmr.msra.gmra.mrb[0].mxu1 %vm564_vm5, %v559_v9  ;;  %2214 = vmatprep.mubr.msk.bf16.mxu0 %vm2955_vm4, %v2954_v2  ;;  %v557_v26 = vpack.c.bf16 %v543_v23, %v542_v22  ;;  %v562_v27 = vpack.c.bf16 %v553_v25, %v552_v24  ;;  %v545_v29 = vld [vmem:[%s3378_s2 + $0x48] sm:$0xff]  ;;  %v3468_v31 = vld [vmem:[#allocation8] ss:$0 sm:$0xff]  ;;  %v3470_v33 = vld [vmem:[#allocation9] ss:$0 sm:$0xff] }
 0x16d   : > { %2234 = vmatprep.mubr.msk.bf16.mxu1 %vm2955_vm4, %v2954_v2  ;;  %v558_v30 = vpack.c.bf16 %v545_v29, %v544_v28 }
 0x173   : > { %2215 = vmatmul.mubr.msk.bf16.gmra.mrb[4].mxu0 %vm564_vm5, %v555_v14 }
 0x174   : > { %2235 = vmatmul.mubr.msk.bf16.gmra.mrb[4].mxu1 %vm564_vm5, %v560_v15  ;;  %2218 = vmatprep.mubr.msk.bf16.mxu0 %vm2955_vm4, %v2954_v2 }
 0x175   : > { %2238 = vmatprep.mubr.msk.bf16.mxu1 %vm2955_vm4, %v2954_v2 }
 0x17b   : > { %2219 = vmatmul.mubr.msk.bf16.gmra.mrb[8].mxu0 %vm564_vm5, %v556_v20 }
 0x17c   : > { %2239 = vmatmul.mubr.msk.bf16.gmra.mrb[8].mxu1 %vm564_vm5, %v561_v21  ;;  %2222 = vmatprep.mubr.msk.bf16.mxu0 %vm2955_vm4, %v2954_v2 }
 0x17d   : > { %2242 = vmatprep.mubr.msk.bf16.mxu1 %vm2955_vm4, %v2954_v2 }
 0x183   : > { %2223 = vmatmul.mubr.msk.bf16.gmra.mrb[12].mxu0 %vm564_vm5, %v557_v26 }
 0x184   : > { %2243 = vmatmul.mubr.msk.bf16.gmra.mrb[12].mxu1 %vm564_vm5, %v562_v27  ;;  %2226 = vmatprep.mubr.msk.bf16.mxu0 %vm2955_vm4, %v2954_v2 }
 0x18b   : > { %2227 = vmatmul.mubr.msk.bf16.gmra.mrb[16].mxu0 %vm564_vm5, %v558_v30 }
 0x23e   : > { %v630_v32 = vpop.f32.mrb[0].mxu0 }
 0x23f   : > { %v708_v34 = vmul.f32 %v3468_v31, %v630_v32  ;;  %v2212_v35 = vpop.f32.mrb[1].mxu0  ;;  %v670_v36 = vpop.f32.mrb[0].mxu1 }
 0x240   : > { %v633_v37 = vpop.f32.mrb[2].mxu0  ;;  %v718_v38 = vmul.f32 %v3468_v31, %v670_v36  ;;  %v2232_v39 = vpop.f32.mrb[1].mxu1 }
 0x241   : > { %v733_v40 = vadd.f32 %v3470_v33, %v708_v34  ;;  %v709_v41 = vmul.f32 %v3468_v31, %v633_v37  ;;  %v2213_v42 = vpop.f32.mrb[3].mxu0  ;;  %v673_v43 = vpop.f32.mrb[2].mxu1 }
 0x242   : > { %v743_v44 = vadd.f32 %v3470_v33, %v718_v38  ;;  %v719_v45 = vmul.f32 %v3468_v31, %v673_v43  ;;  %v2233_v46 = vpop.f32.mrb[3].mxu1 }
 0x243   : > { %v751_v47 = vmax.f32 %v733_v40, 0.0  ;;  %v734_v48 = vadd.f32 %v3470_v33, %v709_v41 }
 0x244   : > { %v761_v49 = vmax.f32 %v743_v44, 0.0  ;;  %v744_v50 = vadd.f32 %v3470_v33, %v719_v45 }
 0x245   : > { %v769_v51 = vmin.f32 %v751_v47, 6.0  ;;  %v752_v52 = vmax.f32 %v734_v48, 0.0 }
 0x246   : > { %v779_v53 = vmin.f32 %v761_v49, 6.0  ;;  %v762_v54 = vmax.f32 %v744_v50, 0.0  ;;  %v638_v55 = vpop.f32.mrb[4].mxu0 }
 0x247   : > { %789 = vst.msk [vmem:[#allocation2 + $0x19] sm:$0xff] %vm788_vm1, %v769_v51  ;;  %v770_v56 = vmin.f32 %v752_v52, 6.0  ;;  %v710_v57 = vmul.f32 %v3468_v31, %v638_v55  ;;  %v2216_v58 = vpop.f32.mrb[5].mxu0  ;;  %v678_v59 = vpop.f32.mrb[4].mxu1 }
 0x248   : > { %799 = vst.msk [vmem:[#allocation2 + $0x91] sm:$0xff] %vm788_vm1, %v779_v53  ;;  %v780_v60 = vmin.f32 %v762_v54, 6.0  ;;  %v641_v61 = vpop.f32.mrb[6].mxu0  ;;  %v720_v62 = vmul.f32 %v3468_v31, %v678_v59  ;;  %v2236_v63 = vpop.f32.mrb[5].mxu1 }
 0x249   : > { %790 = vst.msk [vmem:[#allocation2 + $0x21] sm:$0xff] %vm788_vm1, %v770_v56  ;;  %v735_v0 = vadd.f32 %v3470_v33, %v710_v57  ;;  %v711_v1 = vmul.f32 %v3468_v31, %v641_v61  ;;  %v2217_v2 = vpop.f32.mrb[7].mxu0  ;;  %v681_v3 = vpop.f32.mrb[6].mxu1 }
 0x24a   : > { %800 = vst.msk [vmem:[#allocation2 + $0x99] sm:$0xff] %vm788_vm1, %v780_v60  ;;  %v745_v4 = vadd.f32 %v3470_v33, %v720_v62  ;;  %v721_v5 = vmul.f32 %v3468_v31, %v681_v3  ;;  %v2237_v6 = vpop.f32.mrb[7].mxu1 }
 0x24b   : > { %v753_v7 = vmax.f32 %v735_v0, 0.0  ;;  %v736_v8 = vadd.f32 %v3470_v33, %v711_v1 }
 0x24c   : > { %v763_v9 = vmax.f32 %v745_v4, 0.0  ;;  %v746_v10 = vadd.f32 %v3470_v33, %v721_v5 }
 0x24d   : > { %v771_v11 = vmin.f32 %v753_v7, 6.0  ;;  %v754_v12 = vmax.f32 %v736_v8, 0.0 }
 0x24e   : > { %v781_v13 = vmin.f32 %v763_v9, 6.0  ;;  %v764_v14 = vmax.f32 %v746_v10, 0.0  ;;  %v646_v15 = vpop.f32.mrb[8].mxu0 }
 0x24f   : > { %791 = vst.msk [vmem:[#allocation2 + $0x31] sm:$0xff] %vm788_vm1, %v771_v11  ;;  %v772_v16 = vmin.f32 %v754_v12, 6.0  ;;  %v712_v17 = vmul.f32 %v3468_v31, %v646_v15  ;;  %v2220_v18 = vpop.f32.mrb[9].mxu0  ;;  %v686_v19 = vpop.f32.mrb[8].mxu1 }
 0x250   : > { %801 = vst.msk [vmem:[#allocation2 + $0xa9] sm:$0xff] %vm788_vm1, %v781_v13  ;;  %v782_v20 = vmin.f32 %v764_v14, 6.0  ;;  %v649_v21 = vpop.f32.mrb[10].mxu0  ;;  %v722_v22 = vmul.f32 %v3468_v31, %v686_v19  ;;  %v2240_v23 = vpop.f32.mrb[9].mxu1 }
 0x251   : > { %792 = vst.msk [vmem:[#allocation2 + $0x39] sm:$0xff] %vm788_vm1, %v772_v16  ;;  %v737_v24 = vadd.f32 %v3470_v33, %v712_v17  ;;  %v713_v25 = vmul.f32 %v3468_v31, %v649_v21  ;;  %v2221_v26 = vpop.f32.mrb[11].mxu0  ;;  %v689_v27 = vpop.f32.mrb[10].mxu1 }
 0x252   : > { %802 = vst.msk [vmem:[#allocation2 + $0xb1] sm:$0xff] %vm788_vm1, %v782_v20  ;;  %v747_v28 = vadd.f32 %v3470_v33, %v722_v22  ;;  %v723_v29 = vmul.f32 %v3468_v31, %v689_v27  ;;  %v2241_v30 = vpop.f32.mrb[11].mxu1 }
 0x253   : > { %v755_v32 = vmax.f32 %v737_v24, 0.0  ;;  %v738_v34 = vadd.f32 %v3470_v33, %v713_v25 }
 0x254   : > { %v765_v35 = vmax.f32 %v747_v28, 0.0  ;;  %v748_v36 = vadd.f32 %v3470_v33, %v723_v29 }
 0x255   : > { %v773_v37 = vmin.f32 %v755_v32, 6.0  ;;  %v756_v38 = vmax.f32 %v738_v34, 0.0 }
 0x256   : > { %v783_v39 = vmin.f32 %v765_v35, 6.0  ;;  %v766_v40 = vmax.f32 %v748_v36, 0.0  ;;  %v654_v41 = vpop.f32.mrb[12].mxu0 }
 0x257   : > { %793 = vst.msk [vmem:[#allocation2 + $0x49] sm:$0xff] %vm788_vm1, %v773_v37  ;;  %v774_v42 = vmin.f32 %v756_v38, 6.0  ;;  %v714_v43 = vmul.f32 %v3468_v31, %v654_v41  ;;  %v2224_v44 = vpop.f32.mrb[13].mxu0  ;;  %v694_v45 = vpop.f32.mrb[12].mxu1 }
 0x258   : > { %803 = vst.msk [vmem:[#allocation2 + $0xc1] sm:$0xff] %vm788_vm1, %v783_v39  ;;  %v784_v46 = vmin.f32 %v766_v40, 6.0  ;;  %v657_v47 = vpop.f32.mrb[14].mxu0  ;;  %v724_v48 = vmul.f32 %v3468_v31, %v694_v45  ;;  %v2244_v49 = vpop.f32.mrb[13].mxu1 }
 0x259   : > { %794 = vst.msk [vmem:[#allocation2 + $0x51] sm:$0xff] %vm788_vm1, %v774_v42  ;;  %v739_v50 = vadd.f32 %v3470_v33, %v714_v43  ;;  %v715_v51 = vmul.f32 %v3468_v31, %v657_v47  ;;  %v2225_v52 = vpop.f32.mrb[15].mxu0  ;;  %v697_v53 = vpop.f32.mrb[14].mxu1 }
 0x25a   : > { %804 = vst.msk [vmem:[#allocation2 + $0xc9] sm:$0xff] %vm788_vm1, %v784_v46  ;;  %v749_v54 = vadd.f32 %v3470_v33, %v724_v48  ;;  %v725_v55 = vmul.f32 %v3468_v31, %v697_v53  ;;  %v2245_v56 = vpop.f32.mrb[15].mxu1 }
 0x25b   : > { %v757_v57 = vmax.f32 %v739_v50, 0.0  ;;  %v740_v58 = vadd.f32 %v3470_v33, %v715_v51 }
 0x25c   : > { %v767_v59 = vmax.f32 %v749_v54, 0.0  ;;  %v750_v60 = vadd.f32 %v3470_v33, %v725_v55 }
 0x25d   : > { %v775_v61 = vmin.f32 %v757_v57, 6.0  ;;  %v758_v62 = vmax.f32 %v740_v58, 0.0 }
 0x25e   : > { %v785_v63 = vmin.f32 %v767_v59, 6.0  ;;  %v768_v0 = vmax.f32 %v750_v60, 0.0  ;;  %v662_v1 = vpop.f32.mrb[16].mxu0 }
 0x25f   : > { %795 = vst.msk [vmem:[#allocation2 + $0x61] sm:$0xff] %vm788_vm1, %v775_v61  ;;  %v776_v2 = vmin.f32 %v758_v62, 6.0  ;;  %v716_v3 = vmul.f32 %v3468_v31, %v662_v1  ;;  %v2228_v4 = vpop.f32.mrb[17].mxu0 }
 0x260   : > { %805 = vst.msk [vmem:[#allocation2 + $0xd9] sm:$0xff] %vm788_vm1, %v785_v63  ;;  %v786_v5 = vmin.f32 %v768_v0, 6.0  ;;  %v665_v6 = vpop.f32.mrb[18].mxu0 }
 0x261   : > { %796 = vst.msk [vmem:[#allocation2 + $0x69] sm:$0xff] %vm788_vm1, %v776_v2  ;;  %v741_v7 = vadd.f32 %v3470_v33, %v716_v3  ;;  %v717_v8 = vmul.f32 %v3468_v31, %v665_v6  ;;  %v2229_v9 = vpop.f32.mrb[19].mxu0 }
 0x262   : > { %806 = vst.msk [vmem:[#allocation2 + $0xe1] sm:$0xff] %vm788_vm1, %v786_v5 }
 0x263   : > { %v759_v10 = vmax.f32 %v741_v7, 0.0  ;;  %v742_v11 = vadd.f32 %v3470_v33, %v717_v8 }
 0x265   : > { %v777_v12 = vmin.f32 %v759_v10, 6.0  ;;  %v760_v13 = vmax.f32 %v742_v11, 0.0 }
 0x267   : > { %797 = vst.msk [vmem:[#allocation2 + $0x79] sm:$0xff] %vm788_vm1, %v777_v12  ;;  %v778_v14 = vmin.f32 %v760_v13, 6.0 }
 0x269   : > { %798 = vst.msk [vmem:[#allocation2 + $0x81] sm:$0xff] %vm788_vm1, %v778_v14 }
 0x26a PF: > { %s4264_s28 = sld [smem:[#allocation30_spill]] }
 0x270   : > { %p2117_p8 = scmp.ne.s32.totalorder %s4264_s28, 1 }
 0x271   : > { %vm1067_vm6 = vcmask (!%p2117_p8), 130048   ;;  %vm1089_vm7 = vcmask (!%p2117_p8), 123904   ;;  %v843_v31 = vld [vmem:[#allocation6] sm:$0xf] (!%p2117_p8)  ;;  %vm872_vm8 = vcmask (!%p2117_p8), 1043456   ;;  %v2956_v33 = vmov (!%p2117_p8), 0.0  }
 0x272   : > { %814 = sbr.rel (%p2117_p8) target bundleno = 885 (0x375), region = 108  ;;  %2246 = vmatprep.subr.bf16.mxu0 (!%p2117_p8), %v2956_v33  ;;  %1087 = vst.msk [vmem:[#allocation2 + $0xd8] sm:$0xff] (!%p2117_p8), %vm1067_vm6, %v2956_v33  ;;  %1088 = vst.msk [vmem:[#allocation2 + $0xe0] sm:$0xff] (!%p2117_p8), %vm1067_vm6, %v2956_v33  ;;  %v874_v15 = vsel (!%p2117_p8), %vm872_vm8, %v843_v31, 0  ;;  %v2118_v16 = vld [vmem:[%s3378_s2 + $0x70] sm:$0xff] (!%p2117_p8)  ;;  %v2119_v17 = vld [vmem:[%s3378_s2 + $0x78] sm:$0xff] (!%p2117_p8)  ;;  %2304 = vmatprep.subr.bf16.mxu1 (!%p2117_p8), %v2956_v33 }
 0x273   : > { %1090 = vst.msk [vmem:[#allocation2 + $0xe8] sm:$0x3] (!%p2117_p8), %vm1089_vm7, %v2956_v33  ;;  %v2128_v18 = vld [vmem:[%s3378_s2 + $0xc0] sm:$0xff] (!%p2117_p8)  ;;  %2247 = vmatpush3.bf16.msra.mxu0 (!%p2117_p8), %v874_v15  ;;  %vm2957_vm9 = vmmov (!%p2117_p8), 0   ;;  %v834_v19 = vpack.c.bf16 (!%p2117_p8), %v2119_v17, %v2118_v16  ;;  %vm844_vm10 = vcmask (!%p2117_p8), 64512   ;;  %v2129_v20 = vld [vmem:[%s3378_s2 + $0xc8] sm:$0xff] (!%p2117_p8)  ;;  %2305 = vmatpush3.bf16.msra.mxu1 (!%p2117_p8), %v874_v15 }
 0x274   : > { %2248 = vmatprep.mubr.msk.bf16.mxu0 (!%p2117_p8), %vm2957_vm9, %v2956_v33  ;;  %2268 = vmatprep.mubr.msk.bf16.mxu1 (!%p2117_p8), %vm2957_vm9, %v2956_v33  ;;  %v839_v21 = vpack.c.bf16 (!%p2117_p8), %v2129_v20, %v2128_v18  ;;  %v2120_v22 = vld [vmem:[%s3378_s2 + $0x80] sm:$0xff] (!%p2117_p8)  ;;  %v2121_v23 = vld [vmem:[%s3378_s2 + $0x88] sm:$0xff] (!%p2117_p8)  ;;  %v2130_v24 = vld [vmem:[%s3378_s2 + $0xd0] sm:$0xff] (!%p2117_p8) }
 0x275   : > { %v2131_v25 = vld [vmem:[%s3378_s2 + $0xd8] sm:$0xff] (!%p2117_p8)  ;;  %v835_v26 = vpack.c.bf16 (!%p2117_p8), %v2121_v23, %v2120_v22  ;;  %v2122_v28 = vld [vmem:[%s3378_s2 + $0x90] sm:$0xff] (!%p2117_p8)  ;;  %v2132_v30 = vld [vmem:[%s3378_s2 + $0xe0] sm:$0xff] (!%p2117_p8) }
 0x276   : > { %2249 = vmatmul.mubr.msk.bf16.vlgmr.msra.gmra.mrb[0].mxu0 (!%p2117_p8), %vm844_vm10, %v834_v19  ;;  %2269 = vmatmul.mubr.msk.bf16.vlgmr.msra.gmra.mrb[0].mxu1 (!%p2117_p8), %vm844_vm10, %v839_v21  ;;  %v840_v27 = vpack.c.bf16 (!%p2117_p8), %v2131_v25, %v2130_v24  ;;  %v2123_v29 = vld [vmem:[%s3378_s2 + $0x98] sm:$0xff] (!%p2117_p8)  ;;  %v2133_v32 = vld [vmem:[%s3378_s2 + $0xe8] sm:$0xff] (!%p2117_p8)  ;;  %v2124_v36 = vld [vmem:[%s3378_s2 + $0xa0] sm:$0xff] (!%p2117_p8) }
 0x277   : > { %2252 = vmatprep.mubr.msk.bf16.mxu0 (!%p2117_p8), %vm2957_vm9, %v2956_v33  ;;  %2272 = vmatprep.mubr.msk.bf16.mxu1 (!%p2117_p8), %vm2957_vm9, %v2956_v33  ;;  %v836_v34 = vpack.c.bf16 (!%p2117_p8), %v2123_v29, %v2122_v28  ;;  %v841_v35 = vpack.c.bf16 (!%p2117_p8), %v2133_v32, %v2132_v30  ;;  %v2125_v37 = vld [vmem:[%s3378_s2 + $0xa8] sm:$0xff] (!%p2117_p8)  ;;  %v2134_v38 = vld [vmem:[%s3378_s2 + $0xf0] sm:$0xff] (!%p2117_p8)  ;;  %v2135_v39 = vld [vmem:[%s3378_s2 + $0xf8] sm:$0xff] (!%p2117_p8) }
 0x278   : > { %v837_v40 = vpack.c.bf16 (!%p2117_p8), %v2125_v37, %v2124_v36  ;;  %v842_v41 = vpack.c.bf16 (!%p2117_p8), %v2135_v39, %v2134_v38  ;;  %v2126_v42 = vld [vmem:[%s3378_s2 + $0xb0] sm:$0xff] (!%p2117_p8)  ;;  %v2127_v43 = vld [vmem:[%s3378_s2 + $0xb8] sm:$0xff] (!%p2117_p8)  ;;  %v3565_v45 = vld [vmem:[#allocation8] ss:$0 sm:$0xff] (!%p2117_p8) }
 0x279   : > { %v838_v44 = vpack.c.bf16 %v2127_v43, %v2126_v42  ;;  %v3567_v47 = vld [vmem:[#allocation9] ss:$0 sm:$0xff] }
 0x27e   : > { %2253 = vmatmul.mubr.msk.bf16.gmra.mrb[4].mxu0 %vm844_vm10, %v835_v26  ;;  %2273 = vmatmul.mubr.msk.bf16.gmra.mrb[4].mxu1 %vm844_vm10, %v840_v27 }
 0x27f   : > { %2256 = vmatprep.mubr.msk.bf16.mxu0 %vm2957_vm9, %v2956_v33  ;;  %2276 = vmatprep.mubr.msk.bf16.mxu1 %vm2957_vm9, %v2956_v33 }
 0x286   : > { %2257 = vmatmul.mubr.msk.bf16.gmra.mrb[8].mxu0 %vm844_vm10, %v836_v34  ;;  %2277 = vmatmul.mubr.msk.bf16.gmra.mrb[8].mxu1 %vm844_vm10, %v841_v35 }
 0x287   : > { %2260 = vmatprep.mubr.msk.bf16.mxu0 %vm2957_vm9, %v2956_v33  ;;  %2280 = vmatprep.mubr.msk.bf16.mxu1 %vm2957_vm9, %v2956_v33 }
 0x28e   : > { %2261 = vmatmul.mubr.msk.bf16.gmra.mrb[12].mxu0 %vm844_vm10, %v837_v40  ;;  %2281 = vmatmul.mubr.msk.bf16.gmra.mrb[12].mxu1 %vm844_vm10, %v842_v41 }
 0x28f   : > { %2264 = vmatprep.mubr.msk.bf16.mxu0 %vm2957_vm9, %v2956_v33 }
 0x296   : > { %2265 = vmatmul.mubr.msk.bf16.gmra.mrb[16].mxu0 %vm844_vm10, %v838_v44 }
 0x349   : > { %v910_v46 = vpop.f32.mrb[0].mxu0  ;;  %v950_v50 = vpop.f32.mrb[0].mxu1 }
 0x34a   : > { %v988_v48 = vmul.f32 %v3565_v45, %v910_v46  ;;  %v2250_v49 = vpop.f32.mrb[1].mxu0  ;;  %v998_v52 = vmul.f32 %v3565_v45, %v950_v50  ;;  %v2270_v53 = vpop.f32.mrb[1].mxu1 }
 0x34b   : > { %v913_v51 = vpop.f32.mrb[2].mxu0  ;;  %v953_v57 = vpop.f32.mrb[2].mxu1 }
 0x34c   : > { %v1013_v54 = vadd.f32 %v3567_v47, %v988_v48  ;;  %v989_v55 = vmul.f32 %v3565_v45, %v913_v51  ;;  %v2251_v56 = vpop.f32.mrb[3].mxu0  ;;  %v1023_v58 = vadd.f32 %v3567_v47, %v998_v52  ;;  %v999_v59 = vmul.f32 %v3565_v45, %v953_v57  ;;  %v2271_v60 = vpop.f32.mrb[3].mxu1 }
 0x34e   : > { %v1031_v61 = vmax.f32 %v1013_v54, 0.0  ;;  %v1014_v62 = vadd.f32 %v3567_v47, %v989_v55  ;;  %v1041_v63 = vmax.f32 %v1023_v58, 0.0  ;;  %v1024_v0 = vadd.f32 %v3567_v47, %v999_v59 }
 0x350   : > { %v1049_v1 = vmin.f32 %v1031_v61, 6.0  ;;  %v1032_v2 = vmax.f32 %v1014_v62, 0.0  ;;  %v1059_v3 = vmin.f32 %v1041_v63, 6.0  ;;  %v1042_v4 = vmax.f32 %v1024_v0, 0.0 }
 0x351   : > { %v918_v5 = vpop.f32.mrb[4].mxu0  ;;  %v958_v9 = vpop.f32.mrb[4].mxu1 }
 0x352   : > { %1068 = vst.msk [vmem:[#allocation2 + $0x1] sm:$0xff] %vm1067_vm6, %v1049_v1  ;;  %v1050_v6 = vmin.f32 %v1032_v2, 6.0  ;;  %v990_v7 = vmul.f32 %v3565_v45, %v918_v5  ;;  %v2254_v8 = vpop.f32.mrb[5].mxu0  ;;  %1078 = vst.msk [vmem:[#allocation2 + $0x79] sm:$0xff] %vm1067_vm6, %v1059_v3  ;;  %v1060_v10 = vmin.f32 %v1042_v4, 6.0  ;;  %v1000_v12 = vmul.f32 %v3565_v45, %v958_v9  ;;  %v2274_v13 = vpop.f32.mrb[5].mxu1 }
 0x353   : > { %v921_v11 = vpop.f32.mrb[6].mxu0  ;;  %v961_v15 = vpop.f32.mrb[6].mxu1 }
 0x354   : > { %1069 = vst.msk [vmem:[#allocation2 + $0x9] sm:$0xff] %vm1067_vm6, %v1050_v6  ;;  %v1015_v14 = vadd.f32 %v3567_v47, %v990_v7  ;;  %v991_v31 = vmul.f32 %v3565_v45, %v921_v11  ;;  %v2255_v33 = vpop.f32.mrb[7].mxu0  ;;  %1079 = vst.msk [vmem:[#allocation2 + $0x81] sm:$0xff] %vm1067_vm6, %v1060_v10  ;;  %v1025_v16 = vadd.f32 %v3567_v47, %v1000_v12  ;;  %v2275_v18 = vpop.f32.mrb[7].mxu1 }
 0x355   : > { %v1001_v17 = vmul.f32 %v3565_v45, %v961_v15 }
 0x356   : > { %v1033_v19 = vmax.f32 %v1015_v14, 0.0  ;;  %v1016_v20 = vadd.f32 %v3567_v47, %v991_v31  ;;  %v1043_v21 = vmax.f32 %v1025_v16, 0.0 }
 0x357   : > { %v1026_v22 = vadd.f32 %v3567_v47, %v1001_v17 }
 0x358   : > { %v1051_v23 = vmin.f32 %v1033_v19, 6.0  ;;  %v1034_v24 = vmax.f32 %v1016_v20, 0.0  ;;  %v1061_v25 = vmin.f32 %v1043_v21, 6.0 }
 0x359   : > { %v1044_v26 = vmax.f32 %v1026_v22, 0.0  ;;  %v926_v27 = vpop.f32.mrb[8].mxu0  ;;  %v966_v32 = vpop.f32.mrb[8].mxu1 }
 0x35a   : > { %1070 = vst.msk [vmem:[#allocation2 + $0x19] sm:$0xff] %vm1067_vm6, %v1051_v23  ;;  %v1052_v28 = vmin.f32 %v1034_v24, 6.0  ;;  %v992_v29 = vmul.f32 %v3565_v45, %v926_v27  ;;  %v2258_v30 = vpop.f32.mrb[9].mxu0  ;;  %1080 = vst.msk [vmem:[#allocation2 + $0x91] sm:$0xff] %vm1067_vm6, %v1061_v25  ;;  %v1002_v36 = vmul.f32 %v3565_v45, %v966_v32  ;;  %v2278_v37 = vpop.f32.mrb[9].mxu1 }
 0x35b   : > { %v1062_v34 = vmin.f32 %v1044_v26, 6.0  ;;  %v929_v35 = vpop.f32.mrb[10].mxu0  ;;  %v969_v41 = vpop.f32.mrb[10].mxu1 }
 0x35c   : > { %1071 = vst.msk [vmem:[#allocation2 + $0x21] sm:$0xff] %vm1067_vm6, %v1052_v28  ;;  %v1017_v38 = vadd.f32 %v3567_v47, %v992_v29  ;;  %v993_v39 = vmul.f32 %v3565_v45, %v929_v35  ;;  %v2259_v40 = vpop.f32.mrb[11].mxu0  ;;  %v1027_v42 = vadd.f32 %v3567_v47, %v1002_v36  ;;  %v1003_v43 = vmul.f32 %v3565_v45, %v969_v41  ;;  %v2279_v44 = vpop.f32.mrb[11].mxu1 }
 0x35d   : > { %1081 = vst.msk [vmem:[#allocation2 + $0x99] sm:$0xff] %vm1067_vm6, %v1062_v34 }
 0x35e   : > { %v1035_v46 = vmax.f32 %v1017_v38, 0.0  ;;  %v1018_v48 = vadd.f32 %v3567_v47, %v993_v39  ;;  %v1045_v49 = vmax.f32 %v1027_v42, 0.0  ;;  %v1028_v50 = vadd.f32 %v3567_v47, %v1003_v43 }
 0x360   : > { %v1053_v51 = vmin.f32 %v1035_v46, 6.0  ;;  %v1036_v52 = vmax.f32 %v1018_v48, 0.0  ;;  %v1063_v53 = vmin.f32 %v1045_v49, 6.0  ;;  %v1046_v54 = vmax.f32 %v1028_v50, 0.0 }
 0x361   : > { %v934_v55 = vpop.f32.mrb[12].mxu0  ;;  %v974_v59 = vpop.f32.mrb[12].mxu1 }
 0x362   : > { %1072 = vst.msk [vmem:[#allocation2 + $0x31] sm:$0xff] %vm1067_vm6, %v1053_v51  ;;  %v1054_v56 = vmin.f32 %v1036_v52, 6.0  ;;  %v994_v57 = vmul.f32 %v3565_v45, %v934_v55  ;;  %v2262_v58 = vpop.f32.mrb[13].mxu0  ;;  %1082 = vst.msk [vmem:[#allocation2 + $0xa9] sm:$0xff] %vm1067_vm6, %v1063_v53  ;;  %v1064_v60 = vmin.f32 %v1046_v54, 6.0  ;;  %v1004_v62 = vmul.f32 %v3565_v45, %v974_v59  ;;  %v2282_v63 = vpop.f32.mrb[13].mxu1 }
 0x363   : > { %v937_v61 = vpop.f32.mrb[14].mxu0  ;;  %v977_v3 = vpop.f32.mrb[14].mxu1 }
 0x364   : > { %1073 = vst.msk [vmem:[#allocation2 + $0x39] sm:$0xff] %vm1067_vm6, %v1054_v56  ;;  %v1019_v0 = vadd.f32 %v3567_v47, %v994_v57  ;;  %v995_v1 = vmul.f32 %v3565_v45, %v937_v61  ;;  %v2263_v2 = vpop.f32.mrb[15].mxu0  ;;  %1083 = vst.msk [vmem:[#allocation2 + $0xb1] sm:$0xff] %vm1067_vm6, %v1064_v60  ;;  %v1029_v4 = vadd.f32 %v3567_v47, %v1004_v62  ;;  %v2283_v6 = vpop.f32.mrb[15].mxu1 }
 0x365   : > { %v1005_v5 = vmul.f32 %v3565_v45, %v977_v3 }
 0x366   : > { %v1037_v7 = vmax.f32 %v1019_v0, 0.0  ;;  %v1020_v8 = vadd.f32 %v3567_v47, %v995_v1  ;;  %v1047_v9 = vmax.f32 %v1029_v4, 0.0 }
 0x367   : > { %v1030_v10 = vadd.f32 %v3567_v47, %v1005_v5 }
 0x368   : > { %v1055_v11 = vmin.f32 %v1037_v7, 6.0  ;;  %v1038_v12 = vmax.f32 %v1020_v8, 0.0  ;;  %v1065_v13 = vmin.f32 %v1047_v9, 6.0 }
 0x369   : > { %v1048_v14 = vmax.f32 %v1030_v10, 0.0  ;;  %v942_v31 = vpop.f32.mrb[16].mxu0 }
 0x36a   : > { %1074 = vst.msk [vmem:[#allocation2 + $0x49] sm:$0xff] %vm1067_vm6, %v1055_v11  ;;  %v1056_v33 = vmin.f32 %v1038_v12, 6.0  ;;  %v996_v15 = vmul.f32 %v3565_v45, %v942_v31  ;;  %v2266_v16 = vpop.f32.mrb[17].mxu0  ;;  %1084 = vst.msk [vmem:[#allocation2 + $0xc1] sm:$0xff] %vm1067_vm6, %v1065_v13 }
 0x36b   : > { %v1066_v17 = vmin.f32 %v1048_v14, 6.0  ;;  %v945_v18 = vpop.f32.mrb[18].mxu0 }
 0x36c   : > { %1075 = vst.msk [vmem:[#allocation2 + $0x51] sm:$0xff] %vm1067_vm6, %v1056_v33  ;;  %v1021_v19 = vadd.f32 %v3567_v47, %v996_v15  ;;  %v997_v20 = vmul.f32 %v3565_v45, %v945_v18  ;;  %v2267_v21 = vpop.f32.mrb[19].mxu0 }
 0x36d   : > { %1085 = vst.msk [vmem:[#allocation2 + $0xc9] sm:$0xff] %vm1067_vm6, %v1066_v17 }
 0x36e   : > { %v1039_v22 = vmax.f32 %v1021_v19, 0.0  ;;  %v1022_v23 = vadd.f32 %v3567_v47, %v997_v20 }
 0x370   : > { %v1057_v24 = vmin.f32 %v1039_v22, 6.0  ;;  %v1040_v25 = vmax.f32 %v1022_v23, 0.0 }
 0x372   : > { %1076 = vst.msk [vmem:[#allocation2 + $0x61] sm:$0xff] %vm1067_vm6, %v1057_v24  ;;  %v1058_v26 = vmin.f32 %v1040_v25, 6.0 }
 0x374   : > { %1077 = vst.msk [vmem:[#allocation2 + $0x69] sm:$0xff] %vm1067_vm6, %v1058_v26 }
 0x375 PF: > { %v2512_v27 = vld [vmem:[#allocation15] sm:$0xff]   ;;  %v1091_v28 = vld [vmem:[#allocation2] sm:$0xff]  ;;  %v3623_v30 = vld [vmem:[#allocation11] ss:$0 sm:$0xff]  ;;  %vm1666_vm11 = vcmask 130048   ;;  %s4273_s26 = sld [smem:[#allocation30_spill]] }
 0x376   : > { %v1092_v29 = vld [vmem:[#allocation2 + $0x8] sm:$0xff]  ;;  %2284 = vmatprep.subr.bf16.mxu0 %v2512_v27  ;;  %2306 = vmatprep.subr.bf16.mxu1 %v2512_v27  ;;  %v1112_v45 = vmul.f32 %v3623_v30, %v1091_v28  ;;  %v3627_v35 = vld [vmem:[#allocation11 + $0x1] ss:$0 sm:$0xff]  ;;  %v3631_v40 = vld [vmem:[#allocation11 + $0x2] ss:$0 sm:$0xff]  ;;  %vm1869_vm12 = vcmask 64512  }
 0x377   : > { %v1113_v32 = vmul.f32 %v3623_v30, %v1092_v29  ;;  %v1144_v47 = vld [vmem:[#allocation2 + $0x1] sm:$0xff]  ;;  %v1145_v34 = vld [vmem:[#allocation2 + $0x9] sm:$0xff]  ;;  %2285 = vmatpush3.bf16.msra.mxu0 %v2512_v27  ;;  %2307 = vmatpush3.bf16.msra.mxu1 %v2512_v27  ;;  %v1251_v43 = vld [vmem:[#allocation2 + $0x18] sm:$0xff]  ;;  %s4274_s3 = sld [smem:[#allocation31_spill]]  ;;  %s1902_s5 = sshll.u32 %s3427_s25, 4  ;;  %s4123_s5 = int_to_ptr.vmem [resolvable:$true] %s1902_s5 }
 0x378   : > { %v1165_v36 = vmul.f32 %v3627_v35, %v1144_v47  ;;  %v1166_v37 = vmul.f32 %v3627_v35, %v1145_v34  ;;  %v1197_v38 = vld [vmem:[#allocation2 + $0x2] sm:$0xff]  ;;  %v1198_v39 = vld [vmem:[#allocation2 + $0xa] sm:$0xff]  ;;  %v3635_v46 = vld [vmem:[#allocation11 + $0x4] ss:$0 sm:$0xff]  ;;  %v1114_v60 = vmul.f32 %v3623_v30, %v1251_v43  ;;  %s4276_s28 = sld [smem:[#allocation44_spill]]  ;;  %p4277_p12 = scmp.ne.s32.totalorder %s4254_s30, 0 }
 0x379   : > { %v1218_v41 = vmul.f32 %v3631_v40, %v1197_v38  ;;  %v1219_v42 = vmul.f32 %v3631_v40, %v1198_v39  ;;  %v1252_v44 = vld [vmem:[#allocation2 + $0x20] sm:$0xff]  ;;  %v1273_v50 = vmul.f32 %v3635_v46, %v1251_v43  ;;  %v3639_v54 = vld [vmem:[#allocation11 + $0x5] ss:$0 sm:$0xff]  ;;  %v3643_v59 = vld [vmem:[#allocation11 + $0x6] ss:$0 sm:$0xff] }
 0x37a   : > { %v1181_v48 = vadd.f32 %v1165_v36, %v1112_v45  ;;  %v1182_v49 = vadd.f32 %v1166_v37, %v1113_v32  ;;  %v1274_v51 = vmul.f32 %v3635_v46, %v1252_v44  ;;  %v1305_v52 = vld [vmem:[#allocation2 + $0x19] sm:$0xff]  ;;  %v1306_v53 = vld [vmem:[#allocation2 + $0x21] sm:$0xff]  ;;  %v1115_v61 = vmul.f32 %v3623_v30, %v1252_v44  ;;  %v3649_v2 = vld [vmem:[#allocation2 + $0x30] sm:$0xff] }
 0x37b   : > { %v1326_v55 = vmul.f32 %v3639_v54, %v1305_v52  ;;  %v1327_v56 = vmul.f32 %v3639_v54, %v1306_v53  ;;  %v1358_v57 = vld [vmem:[#allocation2 + $0x1a] sm:$0xff]  ;;  %v1359_v58 = vld [vmem:[#allocation2 + $0x22] sm:$0xff]  ;;  %v3659_v7 = vld [vmem:[#allocation2 + $0x31] sm:$0xff]  ;;  %v1167_v10 = vmul.f32 %v3627_v35, %v1305_v52  ;;  %v1168_v11 = vmul.f32 %v3627_v35, %v1306_v53  ;;  %s2178_s6 = sshll.u32 %s4273_s26, 7  ;;  %s2172_s24 = sshll.u32 %s4273_s26, 4 }
 0x37c   : > { %v1234_v62 = vadd.f32 %v1218_v41, %v1181_v48  ;;  %v1235_v63 = vadd.f32 %v1219_v42, %v1182_v49  ;;  %v1379_v0 = vmul.f32 %v3643_v59, %v1358_v57  ;;  %v1380_v1 = vmul.f32 %v3643_v59, %v1359_v58  ;;  %v3651_v3 = vld [vmem:[#allocation2 + $0x38] sm:$0xff]  ;;  %v3653_v4 = vld [vmem:[#allocation11 + $0x8] ss:$0 sm:$0xff]  ;;  %v3663_v9 = vld [vmem:[#allocation11 + $0x9] ss:$0 sm:$0xff]  ;;  %s4037_s0 = scalar_lea.vmem %s3378_s2, %s2178_s6 [#allocation3]  ;;  %s4133_s6 = scalar_lea.sflag [#allocation5], %s506_s20 }
 0x37d   : > { %v1434_v5 = vmul.f32 %v3653_v4, %v3649_v2  ;;  %v1435_v6 = vmul.f32 %v3653_v4, %v3651_v3  ;;  %v3661_v8 = vld [vmem:[#allocation2 + $0x39] sm:$0xff]  ;;  %v1487_v14 = vmul.f32 %v3663_v9, %v3659_v7  ;;  %v3675_v16 = vld [vmem:[#allocation11 + $0xa] ss:$0 sm:$0xff]  ;;  %v1183_v20 = vadd.f32 %v1167_v10, %v1114_v60  ;;  %v3683_v24 = vld [vmem:[#allocation2 + $0x68] sm:$0xff]  ;;  %s2173_s27 = sshll.u32 %s4274_s3, 5  ;;  %s2958_s3 = smov [#allocation20]  }
 0x37e   : > { %v1289_v12 = vadd.f32 %v1273_v50, %v1234_v62  ;;  %v1290_v13 = vadd.f32 %v1274_v51, %v1235_v63  ;;  %v1488_v31 = vmul.f32 %v3663_v9, %v3661_v8  ;;  %v3671_v33 = vld [vmem:[#allocation2 + $0x32] sm:$0xff]  ;;  %v3673_v15 = vld [vmem:[#allocation2 + $0x3a] sm:$0xff]  ;;  %v1184_v21 = vadd.f32 %v1168_v11, %v1115_v61  ;;  %v3689_v27 = vld [vmem:[#allocation2 + $0x69] sm:$0xff]  ;;  %s1899_s13 = sadd.s32 %s2173_s27, %s2172_s24  ;;  %s2799_s24 = sshll.u32 %s2958_s3, 4  ;;  %s2800_s24 = int_to_ptr.vmem [resolvable:$false] %s2799_s24 }
 0x37f   : > { %v1540_v17 = vmul.f32 %v3675_v16, %v3671_v33  ;;  %v1541_v18 = vmul.f32 %v3675_v16, %v3673_v15  ;;  %v3681_v19 = vld [vmem:[#allocation2 + $0x60] sm:$0xff]  ;;  %v1220_v28 = vmul.f32 %v3631_v40, %v1358_v57  ;;  %v1121_v29 = vmul.f32 %v3623_v30, %v3683_v24  ;;  %v3700_v34 = vld [vmem:[#allocation2 + $0x6a] sm:$0xff]  ;;  %v3707_v42 = vld [vmem:[#allocation2 + $0x78] sm:$0xff]  ;;  %s2174_s2 = sshll.u32 %s1899_s13, 7  ;;  %s2801_s27 = scalar_lea.vmem %s2800_s24, 4096 }
 0x380   : > { %v1342_v22 = vadd.f32 %v1326_v55, %v1289_v12  ;;  %v1343_v23 = vadd.f32 %v1327_v56, %v1290_v13  ;;  %v1120_v25 = vmul.f32 %v3623_v30, %v3681_v19  ;;  %v3687_v26 = vld [vmem:[#allocation2 + $0x61] sm:$0xff]  ;;  %v1174_v32 = vmul.f32 %v3627_v35, %v3689_v27  ;;  %4265 = vst [vmem:[#allocation33_spill] sm:$0xff] %v3700_v34  ;;  %v3715_v51 = vld [vmem:[#allocation2 + $0x79] sm:$0xff]  ;;  %v3739_v13 = vld [vmem:[#allocation2 + $0x91] sm:$0xff]  ;;  %s4121_s26 = scalar_lea.hbm %s4276_s28, %s2174_s2  ;;  %p2802_p6 = scmp.lt.s32.totalorder %s4123_s5, %s2800_s24 }
 0x381   : > { %v1173_v45 = vmul.f32 %v3627_v35, %v3687_v26  ;;  %v3698_v47 = vld [vmem:[#allocation2 + $0x62] sm:$0xff]  ;;  %v1221_v36 = vmul.f32 %v3631_v40, %v1359_v58  ;;  %v1227_v41 = vmul.f32 %v3631_v40, %v3700_v34  ;;  %v1281_v49 = vmul.f32 %v3635_v46, %v3707_v42  ;;  %v3723_v58 = vld [vmem:[#allocation2 + $0x7a] sm:$0xff]  ;;  %v3777_v34 = vld [vmem:[#allocation2 + $0x50] sm:$0xff] }
 0x382   : > { %v1395_v37 = vadd.f32 %v1379_v0, %v1342_v22  ;;  %v1396_v38 = vadd.f32 %v1380_v1, %v1343_v23  ;;  %v1226_v39 = vmul.f32 %v3631_v40, %v3698_v47  ;;  %v3709_v43 = vld [vmem:[#allocation2 + $0x80] sm:$0xff]  ;;  %v1190_v48 = vadd.f32 %v1174_v32, %v1121_v29  ;;  %4267 = vst [vmem:[#allocation35_spill] sm:$0xff] %v3723_v58  ;;  %v3731_v1 = vld [vmem:[#allocation2 + $0x90] sm:$0xff] }
 0x383   : > { %v1189_v44 = vadd.f32 %v1173_v45, %v1120_v25  ;;  %v1282_v50 = vmul.f32 %v3635_v46, %v3709_v43  ;;  %v3717_v52 = vld [vmem:[#allocation2 + $0x81] sm:$0xff]  ;;  %v1334_v56 = vmul.f32 %v3639_v54, %v3715_v51  ;;  %v1387_v63 = vmul.f32 %v3643_v59, %v3723_v58  ;;  %v3741_v22 = vld [vmem:[#allocation2 + $0x99] sm:$0xff] }
 0x384   : > { %4266 = vst [vmem:[#allocation34_spill] sm:$0xff] %v3717_v52  ;;  %v1450_v53 = vadd.f32 %v1434_v5, %v1395_v37  ;;  %v1451_v55 = vadd.f32 %v1435_v6, %v1396_v38  ;;  %v1335_v57 = vmul.f32 %v3639_v54, %v3717_v52  ;;  %v3725_v60 = vld [vmem:[#allocation2 + $0x82] sm:$0xff]  ;;  %v1243_v62 = vadd.f32 %v1227_v41, %v1190_v48  ;;  %v3733_v5 = vld [vmem:[#allocation2 + $0x98] sm:$0xff] }
 0x385   : > { %4268 = vst [vmem:[#allocation36_spill] sm:$0xff] %v3725_v60  ;;  %v1242_v61 = vadd.f32 %v1226_v39, %v1189_v44  ;;  %v1388_v0 = vmul.f32 %v3643_v59, %v3725_v60  ;;  %v1442_v11 = vmul.f32 %v3653_v4, %v3731_v1  ;;  %v1443_v12 = vmul.f32 %v3653_v4, %v3733_v5  ;;  %v3743_v23 = vld [vmem:[#allocation12] ss:$0 sm:$0xff]  ;;  %v3751_v32 = vld [vmem:[#allocation2 + $0x9a] sm:$0xff]  ;;  %v3757_v44 = vld [vmem:[#allocation14] ss:$0 sm:$0xff] }
 0x386   : > { %v1503_v6 = vadd.f32 %v1487_v14, %v1450_v53  ;;  %v1504_v10 = vadd.f32 %v1488_v31, %v1451_v55  ;;  %v1298_v29 = vadd.f32 %v1282_v50, %v1243_v62  ;;  %v1495_v45 = vmul.f32 %v3663_v9, %v3739_v13  ;;  %v3749_v31 = vld [vmem:[#allocation2 + $0x92] sm:$0xff] }
 0x387   : > { %v1297_v25 = vadd.f32 %v1281_v49, %v1242_v61  ;;  %v1496_v14 = vmul.f32 %v3663_v9, %v3741_v22  ;;  %v1548_v39 = vmul.f32 %v3675_v16, %v3749_v31  ;;  %v1549_v41 = vmul.f32 %v3675_v16, %v3751_v32 }
 0x388   : > { %v1556_v37 = vadd.f32 %v1540_v17, %v1503_v6  ;;  %v1557_v38 = vadd.f32 %v1541_v18, %v1504_v10  ;;  %v1351_v49 = vadd.f32 %v1335_v57, %v1298_v29  ;;  %v1236_v50 = vadd.f32 %v1220_v28, %v1183_v20 }
 0x389   : > { %v1350_v48 = vadd.f32 %v1334_v56, %v1297_v25  ;;  %v1237_v53 = vadd.f32 %v1221_v36, %v1184_v21  ;;  %v1275_v17 = vmul.f32 %v3635_v46, %v3649_v2  ;;  %v1276_v18 = vmul.f32 %v3635_v46, %v3651_v3 }
 0x38a   : > { %v1579_v55 = vmul.f32 %v3743_v23, %v1556_v37  ;;  %v1580_v61 = vmul.f32 %v3743_v23, %v1557_v38  ;;  %v1404_v6 = vadd.f32 %v1388_v0, %v1351_v49  ;;  %v1328_v10 = vmul.f32 %v3639_v54, %v3659_v7  ;;  %v3775_v49 = vld [vmem:[#allocation2 + $0x48] sm:$0xff] }
 0x38b   : > { %v1403_v62 = vadd.f32 %v1387_v63, %v1350_v48  ;;  %v1329_v56 = vmul.f32 %v3639_v54, %v3661_v8  ;;  %v1291_v28 = vadd.f32 %v1275_v17, %v1236_v50  ;;  %v1292_v36 = vadd.f32 %v1276_v18, %v1237_v53 }
 0x38c   : > { %v1602_v20 = vadd.f32 %v3757_v44, %v1579_v55  ;;  %v1603_v21 = vadd.f32 %v3757_v44, %v1580_v61  ;;  %v1459_v25 = vadd.f32 %v1443_v12, %v1404_v6  ;;  %v1381_v29 = vmul.f32 %v3643_v59, %v3671_v33  ;;  %v3785_v6 = vld [vmem:[#allocation2 + $0x51] sm:$0xff] }
 0x38d   : > { %v1458_v57 = vadd.f32 %v1442_v11, %v1403_v62  ;;  %v1382_v63 = vmul.f32 %v3643_v59, %v3673_v15  ;;  %v1344_v38 = vadd.f32 %v1328_v10, %v1291_v28  ;;  %v1345_v48 = vadd.f32 %v1329_v56, %v1292_v36  ;;  %v3783_v62 = vld [vmem:[#allocation2 + $0x49] sm:$0xff] }
 0x38e   : > { %v1618_v0 = vmax.f32 %v1602_v20, 0.0  ;;  %v1619_v37 = vmax.f32 %v1603_v21, 0.0  ;;  %v1512_v61 = vadd.f32 %v1496_v14, %v1459_v25  ;;  %v1436_v11 = vmul.f32 %v3653_v4, %v3775_v49  ;;  %v3791_v20 = vld [vmem:[#allocation2 + $0x4a] sm:$0xff] }
 0x38f   : > { %v1511_v55 = vadd.f32 %v1495_v45, %v1458_v57  ;;  %v1437_v12 = vmul.f32 %v3653_v4, %v3777_v34  ;;  %v1397_v17 = vadd.f32 %v1381_v29, %v1344_v38  ;;  %v1398_v18 = vadd.f32 %v1382_v63, %v1345_v48  ;;  %v3793_v57 = vld [vmem:[#allocation2 + $0x52] sm:$0xff] }
 0x390   : > { %v1634_v50 = vmin.f32 %v1618_v0, 6.0  ;;  %v1635_v53 = vmin.f32 %v1619_v37, 6.0  ;;  %v1565_v56 = vadd.f32 %v1549_v41, %v1512_v61  ;;  %v1489_v45 = vmul.f32 %v3663_v9, %v3783_v62 }
 0x391   : > { %v1564_v10 = vadd.f32 %v1548_v39, %v1511_v55  ;;  %v1490_v14 = vmul.f32 %v3663_v9, %v3785_v6  ;;  %v1452_v28 = vadd.f32 %v1436_v11, %v1397_v17  ;;  %v1453_v36 = vadd.f32 %v1437_v12, %v1398_v18 }
 0x392   : > { %v1650_v21 = vpack.c.bf16 %v1635_v53, %v1634_v50  ;;  %v1542_v25 = vmul.f32 %v3675_v16, %v3791_v20  ;;  %v1588_v39 = vmul.f32 %v3743_v23, %v1565_v56  ;;  %v1543_v41 = vmul.f32 %v3675_v16, %v3793_v57 }
 0x393   : > { %v1587_v29 = vmul.f32 %v3743_v23, %v1564_v10  ;;  %v1122_v63 = vmul.f32 %v3623_v30, %v3707_v42  ;;  %v1505_v0 = vadd.f32 %v1489_v45, %v1452_v28  ;;  %v1506_v37 = vadd.f32 %v1490_v14, %v1453_v36 }
 0x394   : > { %2286 = vmatprep.mubr.msk.bf16.mxu0 %vm1666_vm11, %v1650_v21  ;;  %v1123_v38 = vmul.f32 %v3623_v30, %v3709_v43  ;;  %v1175_v48 = vmul.f32 %v3627_v35, %v3715_v51  ;;  %v1611_v61 = vadd.f32 %v3757_v44, %v1588_v39  ;;  %v1176_v11 = vmul.f32 %v3627_v35, %v3717_v52 }
 0x395   : > { %v1610_v55 = vadd.f32 %v3757_v44, %v1587_v29  ;;  %v1228_v12 = vmul.f32 %v3631_v40, %v3723_v58  ;;  %v1558_v50 = vadd.f32 %v1542_v25, %v1505_v0  ;;  %v1559_v53 = vadd.f32 %v1543_v41, %v1506_v37 }
 0x396   : > { %v1191_v17 = vadd.f32 %v1175_v48, %v1122_v63  ;;  %v1229_v18 = vmul.f32 %v3631_v40, %v3725_v60  ;;  %v1627_v56 = vmax.f32 %v1611_v61, 0.0  ;;  %v1192_v45 = vadd.f32 %v1176_v11, %v1123_v38 }
 0x397   : > { %v1626_v10 = vmax.f32 %v1610_v55, 0.0  ;;  %v1283_v14 = vmul.f32 %v3635_v46, %v3731_v1  ;;  %v1581_v21 = vmul.f32 %v3743_v23, %v1558_v50  ;;  %v1582_v28 = vmul.f32 %v3743_v23, %v1559_v53  ;;  %v3832_v50 = vld [vmem:[#allocation2 + $0xa8] sm:$0xff] }
 0x398   : > { %v1244_v36 = vadd.f32 %v1228_v12, %v1191_v17  ;;  %v1284_v29 = vmul.f32 %v3635_v46, %v3733_v5  ;;  %v1643_v39 = vmin.f32 %v1627_v56, 6.0  ;;  %v1245_v41 = vadd.f32 %v1229_v18, %v1192_v45  ;;  %v3838_v45 = vld [vmem:[#allocation2 + $0xa9] sm:$0xff] }
 0x399   : > { %v1642_v25 = vmin.f32 %v1626_v10, 6.0  ;;  %v1336_v63 = vmul.f32 %v3639_v54, %v3739_v13  ;;  %v1604_v0 = vadd.f32 %v3757_v44, %v1581_v21  ;;  %v1605_v37 = vadd.f32 %v3757_v44, %v1582_v28  ;;  %v3834_v10 = vld [vmem:[#allocation2 + $0xb0] sm:$0xff] }
 0x39a   : > { %v1299_v38 = vadd.f32 %v1283_v14, %v1244_v36  ;;  %v1337_v48 = vmul.f32 %v3639_v54, %v3741_v22  ;;  %v1300_v61 = vadd.f32 %v1284_v29, %v1245_v41  ;;  %v1389_v11 = vmul.f32 %v3643_v59, %v3749_v31  ;;  %v3840_v14 = vld [vmem:[#allocation2 + $0xb1] sm:$0xff] }
 0x39b   : > { %v1654_v55 = vpack.c.bf16 %v1643_v39, %v1642_v25  ;;  %v1390_v12 = vmul.f32 %v3643_v59, %v3751_v32  ;;  %v1620_v53 = vmax.f32 %v1604_v0, 0.0  ;;  %v1621_v17 = vmax.f32 %v1605_v37, 0.0  ;;  %v3849_v25 = vld [vmem:[#allocation2 + $0xaa] sm:$0xff]  ;;  %v3851_v0 = vld [vmem:[#allocation2 + $0xb2] sm:$0xff] }
 0x39c   : > { %v1352_v18 = vadd.f32 %v1336_v63, %v1299_v38  ;;  %v1444_v56 = vmul.f32 %v3653_v4, %v3832_v50  ;;  %v1353_v21 = vadd.f32 %v1337_v48, %v1300_v61  ;;  %v1445_v28 = vmul.f32 %v3653_v4, %v3834_v10 }
 0x39d   : > { %2294 = vmatprep.mubr.msk.bf16.mxu1 %vm1666_vm11, %v1654_v55  ;;  %v1497_v36 = vmul.f32 %v3663_v9, %v3838_v45  ;;  %v1498_v29 = vmul.f32 %v3663_v9, %v3840_v14  ;;  %v1636_v39 = vmin.f32 %v1620_v53, 6.0  ;;  %v1637_v41 = vmin.f32 %v1621_v17, 6.0 }
 0x39e   : > { %v1405_v63 = vadd.f32 %v1389_v11, %v1352_v18  ;;  %v1550_v37 = vmul.f32 %v3675_v16, %v3849_v25  ;;  %v1406_v38 = vadd.f32 %v1390_v12, %v1353_v21  ;;  %v1551_v48 = vmul.f32 %v3675_v16, %v3851_v0 }
 0x39f   : > { %v1116_v55 = vmul.f32 %v3623_v30, %v3649_v2  ;;  %v1117_v61 = vmul.f32 %v3623_v30, %v3651_v3  ;;  %v1651_v60 = vpack.c.bf16 %v1637_v41, %v1636_v39  ;;  %v1169_v11 = vmul.f32 %v3627_v35, %v3659_v7 }
 0x3a0   : > { %v1460_v58 = vadd.f32 %v1444_v56, %v1405_v63  ;;  %v1170_v53 = vmul.f32 %v3627_v35, %v3661_v8  ;;  %v1461_v17 = vadd.f32 %v1445_v28, %v1406_v38  ;;  %v1222_v12 = vmul.f32 %v3631_v40, %v3671_v33 }
 0x3a1   : > { %v1223_v18 = vmul.f32 %v3631_v40, %v3673_v15  ;;  %v1277_v2 = vmul.f32 %v3635_v46, %v3775_v49  ;;  %2287 = vmatmul.mubr.msk.bf16.vlgmr.msra.gmra.mrb[0].mxu0 %vm1666_vm11, %v1651_v60  ;;  %v1185_v56 = vadd.f32 %v1169_v11, %v1116_v55  ;;  %v1278_v7 = vmul.f32 %v3635_v46, %v3777_v34 }
 0x3a2   : > { %v1513_v3 = vadd.f32 %v1497_v36, %v1460_v58  ;;  %v1186_v21 = vadd.f32 %v1170_v53, %v1117_v61  ;;  %v1514_v39 = vadd.f32 %v1498_v29, %v1461_v17  ;;  %v1330_v8 = vmul.f32 %v3639_v54, %v3783_v62  ;;  %v4269_v17 = vld [vmem:[#allocation33_spill] sm:$0xff] }
 0x3a3   : > { %v1331_v33 = vmul.f32 %v3639_v54, %v3785_v6  ;;  %v1383_v15 = vmul.f32 %v3643_v59, %v3791_v20  ;;  %v1238_v41 = vadd.f32 %v1222_v12, %v1185_v56  ;;  %v1384_v58 = vmul.f32 %v3643_v59, %v3793_v57 }
 0x3a4   : > { %v1566_v28 = vadd.f32 %v1550_v37, %v1513_v3  ;;  %v1239_v63 = vadd.f32 %v1223_v18, %v1186_v21  ;;  %v1567_v60 = vadd.f32 %v1551_v48, %v1514_v39  ;;  %v1438_v36 = vmul.f32 %v3653_v4, %v3681_v19 }
 0x3a5   : > { %v1439_v29 = vmul.f32 %v3653_v4, %v3683_v24  ;;  %v1491_v38 = vmul.f32 %v3663_v9, %v3687_v26  ;;  %v1293_v61 = vadd.f32 %v1277_v2, %v1238_v41  ;;  %v1492_v37 = vmul.f32 %v3663_v9, %v3689_v27 }
 0x3a6   : > { %v1589_v55 = vmul.f32 %v3743_v23, %v1566_v28  ;;  %v1294_v11 = vadd.f32 %v1278_v7, %v1239_v63  ;;  %v1590_v53 = vmul.f32 %v3743_v23, %v1567_v60  ;;  %v1544_v48 = vmul.f32 %v3675_v16, %v3698_v47 }
 0x3a7   : > { %v1545_v12 = vmul.f32 %v3675_v16, %v4269_v17  ;;  %v1124_v18 = vmul.f32 %v3623_v30, %v3731_v1  ;;  %v1346_v56 = vadd.f32 %v1330_v8, %v1293_v61  ;;  %v1125_v2 = vmul.f32 %v3623_v30, %v3733_v5 }
 0x3a8   : > { %v1612_v3 = vadd.f32 %v3757_v44, %v1589_v55  ;;  %v1347_v21 = vadd.f32 %v1331_v33, %v1294_v11  ;;  %v1613_v7 = vadd.f32 %v3757_v44, %v1590_v53  ;;  %v1177_v39 = vmul.f32 %v3627_v35, %v3739_v13 }
 0x3a9   : > { %v1178_v28 = vmul.f32 %v3627_v35, %v3741_v22  ;;  %v1230_v41 = vmul.f32 %v3631_v40, %v3749_v31  ;;  %v1399_v1 = vadd.f32 %v1383_v15, %v1346_v56  ;;  %v1231_v8 = vmul.f32 %v3631_v40, %v3751_v32 }
 0x3aa   : > { %v1628_v63 = vmax.f32 %v1612_v3, 0.0  ;;  %v1400_v60 = vadd.f32 %v1384_v58, %v1347_v21  ;;  %v1629_v33 = vmax.f32 %v1613_v7, 0.0  ;;  %v1193_v55 = vadd.f32 %v1177_v39, %v1124_v18  ;;  %v3922_v7 = vld [vmem:[#allocation2 + $0xc0] sm:$0xff]  ;;  %v3924_v39 = vld [vmem:[#allocation2 + $0xc8] sm:$0xff] }
 0x3ab   : > { %v1194_v5 = vadd.f32 %v1178_v28, %v1125_v2  ;;  %v1285_v61 = vmul.f32 %v3635_v46, %v3832_v50  ;;  %v1454_v13 = vadd.f32 %v1438_v36, %v1399_v1  ;;  %v1286_v22 = vmul.f32 %v3635_v46, %v3834_v10 }
 0x3ac   : > { %v1644_v11 = vmin.f32 %v1628_v63, 6.0  ;;  %v1455_v53 = vadd.f32 %v1439_v29, %v1400_v60  ;;  %v1645_v52 = vmin.f32 %v1629_v33, 6.0  ;;  %v1246_v31 = vadd.f32 %v1230_v41, %v1193_v55  ;;  %v3930_v63 = vld [vmem:[#allocation2 + $0xc1] sm:$0xff]  ;;  %v3941_v33 = vld [vmem:[#allocation2 + $0xca] sm:$0xff] }
 0x3ad   : > { %v1247_v3 = vadd.f32 %v1231_v8, %v1194_v5  ;;  %v1338_v15 = vmul.f32 %v3639_v54, %v3838_v45  ;;  %v1507_v58 = vadd.f32 %v1491_v38, %v1454_v13  ;;  %v1339_v18 = vmul.f32 %v3639_v54, %v3840_v14 }
 0x3ae   : > { %v1508_v32 = vadd.f32 %v1492_v37, %v1455_v53  ;;  %v1391_v56 = vmul.f32 %v3643_v59, %v3849_v25  ;;  %v1655_v21 = vpack.c.bf16 %v1645_v52, %v1644_v11  ;;  %v1301_v36 = vadd.f32 %v1285_v61, %v1246_v31  ;;  %v3932_v52 = vld [vmem:[#allocation2 + $0xc9] sm:$0xff] }
 0x3af   : > { %v1302_v29 = vadd.f32 %v1286_v22, %v1247_v3  ;;  %v1392_v2 = vmul.f32 %v3643_v59, %v3851_v0  ;;  %v1560_v28 = vadd.f32 %v1544_v48, %v1507_v58  ;;  %v1446_v38 = vmul.f32 %v3653_v4, %v3922_v7 }
 0x3b0   : > { %v1561_v41 = vadd.f32 %v1545_v12, %v1508_v32  ;;  %v1447_v37 = vmul.f32 %v3653_v4, %v3924_v39  ;;  %2295 = vmatmul.mubr.msk.bf16.vlgmr.msra.gmra.mrb[0].mxu1 %vm1666_vm11, %v1655_v21  ;;  %v1354_v1 = vadd.f32 %v1338_v15, %v1301_v36  ;;  %v1499_v8 = vmul.f32 %v3663_v9, %v3930_v63  ;;  %v3939_v12 = vld [vmem:[#allocation2 + $0xc2] sm:$0xff] }
 0x3b1   : > { %v1355_v60 = vadd.f32 %v1339_v18, %v1302_v29  ;;  %v1500_v48 = vmul.f32 %v3663_v9, %v3932_v52  ;;  %v1583_v55 = vmul.f32 %v3743_v23, %v1560_v28  ;;  %v1552_v61 = vmul.f32 %v3675_v16, %v3939_v12 }
 0x3b2   : > { %v1584_v5 = vmul.f32 %v3743_v23, %v1561_v41  ;;  %v1553_v11 = vmul.f32 %v3675_v16, %v3941_v33  ;;  %v1407_v13 = vadd.f32 %v1391_v56, %v1354_v1  ;;  %v1118_v22 = vmul.f32 %v3623_v30, %v3775_v49 }
 0x3b3   : > { %v1408_v53 = vadd.f32 %v1392_v2, %v1355_v60  ;;  %v1119_v31 = vmul.f32 %v3623_v30, %v3777_v34  ;;  %v1606_v3 = vadd.f32 %v3757_v44, %v1583_v55  ;;  %v1171_v58 = vmul.f32 %v3627_v35, %v3783_v62 }
 0x3b4   : > { %v1607_v15 = vadd.f32 %v3757_v44, %v1584_v5  ;;  %v1172_v32 = vmul.f32 %v3627_v35, %v3785_v6  ;;  %v1462_v18 = vadd.f32 %v1446_v38, %v1407_v13  ;;  %v1224_v56 = vmul.f32 %v3631_v40, %v3791_v20 }
 0x3b5   : > { %v1463_v21 = vadd.f32 %v1447_v37, %v1408_v53  ;;  %v1225_v49 = vmul.f32 %v3631_v40, %v3793_v57  ;;  %v1622_v36 = vmax.f32 %v1606_v3, 0.0  ;;  %v1187_v29 = vadd.f32 %v1171_v58, %v1118_v22  ;;  %v4271_v58 = vld [vmem:[#allocation35_spill] sm:$0xff] }
 0x3b6   : > { %v1623_v34 = vmax.f32 %v1607_v15, 0.0  ;;  %v1188_v2 = vadd.f32 %v1172_v32, %v1119_v31  ;;  %v1515_v28 = vadd.f32 %v1499_v8, %v1462_v18  ;;  %v1279_v62 = vmul.f32 %v3635_v46, %v3681_v19  ;;  %v4270_v15 = vld [vmem:[#allocation34_spill] sm:$0xff] }
 0x3b7   : > { %v1516_v41 = vadd.f32 %v1500_v48, %v1463_v21  ;;  %v1280_v6 = vmul.f32 %v3635_v46, %v3683_v24  ;;  %v1638_v38 = vmin.f32 %v1622_v36, 6.0  ;;  %v1240_v1 = vadd.f32 %v1224_v56, %v1187_v29  ;;  %v4272_v21 = vld [vmem:[#allocation36_spill] sm:$0xff] }
 0x3b8   : > { %v1639_v37 = vmin.f32 %v1623_v34, 6.0  ;;  %v1241_v60 = vadd.f32 %v1225_v49, %v1188_v2  ;;  %v1568_v20 = vadd.f32 %v1552_v61, %v1515_v28  ;;  %v1332_v57 = vmul.f32 %v3639_v54, %v3687_v26 }
 0x3b9   : > { %v1569_v55 = vadd.f32 %v1553_v11, %v1516_v41  ;;  %v1333_v5 = vmul.f32 %v3639_v54, %v3689_v27  ;;  %v1295_v48 = vadd.f32 %v1279_v62, %v1240_v1  ;;  %v1385_v19 = vmul.f32 %v3643_v59, %v3698_v47 }
 0x3ba   : > { %v1652_v8 = vpack.c.bf16 %v1639_v37, %v1638_v38  ;;  %v1296_v13 = vadd.f32 %v1280_v6, %v1241_v60  ;;  %v1591_v24 = vmul.f32 %v3743_v23, %v1568_v20  ;;  %v1386_v61 = vmul.f32 %v3643_v59, %v4269_v17 }
 0x3bb   : > { %v1592_v53 = vmul.f32 %v3743_v23, %v1569_v55  ;;  %v1440_v11 = vmul.f32 %v3653_v4, %v3707_v42  ;;  %v1348_v26 = vadd.f32 %v1332_v57, %v1295_v48  ;;  %v1441_v22 = vmul.f32 %v3653_v4, %v3709_v43  ;;  %v1480_v48 = vld [vmem:[#allocation2 + $0xd9] sm:$0xff] }
 0x3bc   : > { %2290 = vmatprep.mubr.msk.bf16.mxu0 %vm1666_vm11, %v1652_v8  ;;  %v1349_v27 = vadd.f32 %v1333_v5, %v1296_v13  ;;  %v1493_v47 = vmul.f32 %v3663_v9, %v3715_v51  ;;  %v1614_v31 = vadd.f32 %v3757_v44, %v1591_v24  ;;  %v1494_v17 = vmul.f32 %v3663_v9, %v4270_v15  ;;  %v1427_v5 = vld [vmem:[#allocation2 + $0xe0] sm:$0xff] }
 0x3bd   : > { %v1615_v3 = vadd.f32 %v3757_v44, %v1592_v53  ;;  %v1546_v42 = vmul.f32 %v3675_v16, %v4271_v58  ;;  %v1401_v32 = vadd.f32 %v1385_v19, %v1348_v26  ;;  %v1547_v56 = vmul.f32 %v3675_v16, %v4272_v21 }
 0x3be   : > { %v1402_v18 = vadd.f32 %v1386_v61, %v1349_v27  ;;  %v1126_v43 = vmul.f32 %v3623_v30, %v3832_v50  ;;  %v1630_v49 = vmax.f32 %v1614_v31, 0.0  ;;  %v1127_v36 = vmul.f32 %v3623_v30, %v3834_v10  ;;  %v1533_v61 = vld [vmem:[#allocation2 + $0xda] sm:$0xff]  ;;  %v1534_v27 = vld [vmem:[#allocation2 + $0xe2] sm:$0xff] }
 0x3bf   : > { %v1631_v51 = vmax.f32 %v1615_v3, 0.0  ;;  %v1179_v34 = vmul.f32 %v3627_v35, %v3838_v45  ;;  %v1456_v29 = vadd.f32 %v1440_v11, %v1401_v32  ;;  %v1180_v28 = vmul.f32 %v3627_v35, %v3840_v14 }
 0x3c0   : > { %v1457_v2 = vadd.f32 %v1441_v22, %v1402_v18  ;;  %v1232_v41 = vmul.f32 %v3631_v40, %v3849_v25  ;;  %v1646_v62 = vmin.f32 %v1630_v49, 6.0  ;;  %v1233_v50 = vmul.f32 %v3631_v40, %v3851_v0  ;;  %v1426_v0 = vld [vmem:[#allocation2 + $0xd8] sm:$0xff] }
 0x3c1   : > { %v1647_v6 = vmin.f32 %v1631_v51, 6.0  ;;  %v1195_v38 = vadd.f32 %v1179_v34, %v1126_v43  ;;  %v1509_v37 = vadd.f32 %v1493_v47, %v1456_v29  ;;  %v1196_v30 = vadd.f32 %v1180_v28, %v1127_v36  ;;  %v4034_v28 = vld [vmem:[#allocation17] ss:$0 sm:$0xff] }
 0x3c2   : > { %v1510_v1 = vadd.f32 %v1494_v17, %v1457_v2  ;;  %v1287_v10 = vmul.f32 %v3635_v46, %v3922_v7  ;;  %v1288_v35 = vmul.f32 %v3635_v46, %v3924_v39  ;;  %v1340_v14 = vmul.f32 %v3639_v54, %v3930_v63 }
 0x3c3   : > { %v1656_v45 = vpack.c.bf16 %v1647_v6, %v1646_v62  ;;  %v1248_v60 = vadd.f32 %v1232_v41, %v1195_v38  ;;  %v1562_v25 = vadd.f32 %v1546_v42, %v1509_v37  ;;  %v1249_v55 = vadd.f32 %v1233_v50, %v1196_v30  ;;  %v4039_v41 = vld [vmem:[#allocation18] ss:$0 sm:$0xff] }
 0x3c4   : > { %v1563_v20 = vadd.f32 %v1547_v56, %v1510_v1  ;;  %v1341_v40 = vmul.f32 %v3639_v54, %v3932_v52  ;;  %v1393_v7 = vmul.f32 %v3643_v59, %v3939_v12  ;;  %v1394_v63 = vmul.f32 %v3643_v59, %v3941_v33  ;;  %v1481_v52 = vld [vmem:[#allocation2 + $0xe1] sm:$0xff]  ;;  %v1839_v6 = vld [vmem:[%s4037_s0 + $0x10] sm:$0xff] }
 0x3c5   : > { %2298 = vmatprep.mubr.msk.bf16.mxu1 %vm1666_vm11, %v1656_v45  ;;  %v1303_v57 = vadd.f32 %v1287_v10, %v1248_v60  ;;  %v1585_v8 = vmul.f32 %v3743_v23, %v1562_v25  ;;  %v1304_v39 = vadd.f32 %v1288_v35, %v1249_v55  ;;  %v1448_v54 = vmul.f32 %v3653_v4, %v1426_v0  ;;  %v1837_v1 = vld [vmem:[%s4037_s0] sm:$0xff]  ;;  %v1840_v60 = vld [vmem:[%s4037_s0 + $0x18] sm:$0xff] }
 0x3c6   : > { %v1586_v46 = vmul.f32 %v3743_v23, %v1563_v20  ;;  %v1449_v12 = vmul.f32 %v3653_v4, %v1427_v5  ;;  %v1501_v26 = vmul.f32 %v3663_v9, %v1480_v48  ;;  %v1502_v33 = vmul.f32 %v3663_v9, %v1481_v52  ;;  %v1838_v20 = vld [vmem:[%s4037_s0 + $0x8] sm:$0xff] }
 0x3c7   : > { %v1356_v13 = vadd.f32 %v1340_v14, %v1303_v57  ;;  %v1608_v19 = vadd.f32 %v3757_v44, %v1585_v8  ;;  %v1357_v53 = vadd.f32 %v1341_v40, %v1304_v39  ;;  %v1554_v3 = vmul.f32 %v3675_v16, %v1533_v61 }
 0x3c8   : > { %v1609_v24 = vadd.f32 %v3757_v44, %v1586_v46  ;;  %v1555_v42 = vmul.f32 %v3675_v16, %v1534_v27  ;;  %v1847_v46 = vld [vmem:[%s4037_s0 + $0x50] sm:$0xff] }
 0x3c9   : > { %v1409_v11 = vadd.f32 %v1393_v7, %v1356_v13  ;;  %v1624_v22 = vmax.f32 %v1608_v19, 0.0  ;;  %v1410_v59 = vadd.f32 %v1394_v63, %v1357_v53  ;;  %v1845_v13 = vld [vmem:[%s4037_s0 + $0x40] sm:$0xff] }
 0x3ca   : > { %v1625_v47 = vmax.f32 %v1609_v24, 0.0  ;;  %v1848_v24 = vld [vmem:[%s4037_s0 + $0x58] sm:$0xff] }
 0x3cb   : > { %v1464_v31 = vadd.f32 %v1448_v54, %v1409_v11  ;;  %v1640_v15 = vmin.f32 %v1624_v22, 6.0  ;;  %v1465_v58 = vadd.f32 %v1449_v12, %v1410_v59  ;;  %v1846_v11 = vld [vmem:[%s4037_s0 + $0x48] sm:$0xff] }
 0x3cc   : > { %v1641_v17 = vmin.f32 %v1625_v47, 6.0 }
 0x3cd   : > { %v1517_v32 = vadd.f32 %v1501_v26, %v1464_v31  ;;  %v1518_v18 = vadd.f32 %v1502_v33, %v1465_v58 }
 0x3ce   : > { %v1653_v4 = vpack.c.bf16 %v1641_v17, %v1640_v15 }
 0x3cf   : > { %v1570_v21 = vadd.f32 %v1554_v3, %v1517_v32  ;;  %v1571_v56 = vadd.f32 %v1555_v42, %v1518_v18  ;;  %v1843_v3 = vld [vmem:[%s4037_s0 + $0x30] sm:$0xff]  ;;  %v1841_v42 = vld [vmem:[%s4037_s0 + $0x20] sm:$0xff] }
 0x3d0   : > { %2291 = vmatmul.mubr.msk.bf16.gmra.mrb[4].mxu0 %vm1666_vm11, %v1653_v4 }
 0x3d1   : > { %v1593_v43 = vmul.f32 %v3743_v23, %v1570_v21  ;;  %v1594_v9 = vmul.f32 %v3743_v23, %v1571_v56  ;;  %v1844_v21 = vld [vmem:[%s4037_s0 + $0x38] sm:$0xff] }
 0x3d3   : > { %v1616_v49 = vadd.f32 %v3757_v44, %v1593_v43  ;;  %v1617_v51 = vadd.f32 %v3757_v44, %v1594_v9 }
 0x3d5   : > { %v1632_v36 = vmax.f32 %v1616_v49, 0.0  ;;  %v1633_v34 = vmax.f32 %v1617_v51, 0.0  ;;  %v1842_v49 = vld [vmem:[%s4037_s0 + $0x28] sm:$0xff] }
 0x3d7   : > { %v1648_v16 = vmin.f32 %v1632_v36, 6.0  ;;  %v1649_v29 = vmin.f32 %v1633_v34, 6.0 }
 0x3d9   : > { %v1657_v2 = vpack.c.bf16 %v1649_v29, %v1648_v16 }
 0x3db   : > { %2299 = vmatmul.mubr.msk.bf16.gmra.mrb[4].mxu1 %vm1666_vm11, %v1657_v2 }
 0x474   : > { %v2288_v23 = vpop.f32.mrb[0].mxu0 }
 0x475   : > { %v1797_v44 = vmul.f32 %v2288_v23, %v4034_v28  ;;  %v1725_v62 = vpop.f32.mrb[1].mxu0 }
 0x476   : > { %v1795_v38 = vmul.f32 %v4034_v28, %v1725_v62  ;;  %v2289_v50 = vpop.f32.mrb[2].mxu0 }
 0x477   : > { %v1820_v37 = vadd.f32 %v4039_v41, %v1797_v44  ;;  %v1798_v30 = vmul.f32 %v2289_v50, %v4034_v28  ;;  %v1728_v10 = vpop.f32.mrb[3].mxu0  ;;  %v1851_v44 = vld [vmem:[%s4037_s0 + $0x70] sm:$0xff]  ;;  %v1849_v50 = vld [vmem:[%s4037_s0 + $0x60] sm:$0xff] }
 0x478   : > { %v1818_v45 = vadd.f32 %v4039_v41, %v1795_v38  ;;  %v1796_v35 = vmul.f32 %v4034_v28, %v1728_v10  ;;  %v1852_v10 = vld [vmem:[%s4037_s0 + $0x78] sm:$0xff] }
 0x479   : > { %v1855_v14 = vadd.f32 %v1839_v6, %v1820_v37  ;;  %v1821_v25 = vadd.f32 %v4039_v41, %v1798_v30 }
 0x47a   : > { %v1853_v55 = vadd.f32 %v1837_v1, %v1818_v45  ;;  %v1819_v40 = vadd.f32 %v4039_v41, %v1796_v35 }
 0x47b   : > { %1872 = vst.msk [vmem:[%s3427_s25 + $0x10] sm:$0xff] %vm1869_vm12, %v1855_v14  ;;  %v1856_v0 = vadd.f32 %v1840_v60, %v1821_v25  ;;  %v1850_v14 = vld [vmem:[%s4037_s0 + $0x68] sm:$0xff]  ;;  %s2795_s0 = scalar_lea.vmem %s4123_s5, 2048 }
 0x47c   : > { %1870 = vst.msk [vmem:[%s3427_s25] sm:$0xff] %vm1869_vm12, %v1853_v55  ;;  %v1854_v57 = vadd.f32 %v1838_v20, %v1819_v40  ;;  %p2796_p5 = scmp.ne.s32.totalorder %s4123_s5, %s2795_s0  ;;  %p2803_p1 = scmp.lt.s32.totalorder %s2801_s27, %s2795_s0 }
 0x47d   : > { %1873 = vst.msk [vmem:[%s3427_s25 + $0x18] sm:$0xff] %vm1869_vm12, %v1856_v0 }
 0x47e   : > { %1871 = vst.msk [vmem:[%s3427_s25 + $0x8] sm:$0xff] %vm1869_vm12, %v1854_v57  ;;  %p2797_p2 = pnand %p2796_p5, %p4277_p12  ;;  %p2804_p11 = por %p2803_p1, %p2802_p6 }
 0x480   : > { %p2798_p7 = pneg %p2797_p2 }
 0x482   : > { %p2805_p9 = pnand %p2804_p11, %p2798_p7 }
 0x483   : > { %v2296_v7 = vpop.f32.mrb[0].mxu1 }
 0x484   : > { %v1805_v5 = vmul.f32 %v2296_v7, %v4034_v28  ;;  %v1757_v8 = vpop.f32.mrb[1].mxu1 }
 0x485   : > { %v1803_v39 = vmul.f32 %v4034_v28, %v1757_v8  ;;  %v2297_v63 = vpop.f32.mrb[2].mxu1 }
 0x486   : > { %v1828_v48 = vadd.f32 %v4039_v41, %v1805_v5  ;;  %v1806_v54 = vmul.f32 %v2297_v63, %v4034_v28  ;;  %v1760_v52 = vpop.f32.mrb[3].mxu1 }
 0x487   : > { %v1826_v19 = vadd.f32 %v4039_v41, %v1803_v39  ;;  %v1804_v53 = vmul.f32 %v4034_v28, %v1760_v52 }
 0x488   : > { %v1863_v12 = vadd.f32 %v1847_v46, %v1828_v48  ;;  %v1829_v61 = vadd.f32 %v4039_v41, %v1806_v54 }
 0x489   : > { %v1861_v26 = vadd.f32 %v1845_v13, %v1826_v19  ;;  %v1827_v27 = vadd.f32 %v4039_v41, %v1804_v53 }
 0x48a   : > { %1880 = vst.msk [vmem:[%s3427_s25 + $0x50] sm:$0xff] %vm1869_vm12, %v1863_v12  ;;  %v1864_v22 = vadd.f32 %v1848_v24, %v1829_v61 }
 0x48b   : > { %1878 = vst.msk [vmem:[%s3427_s25 + $0x40] sm:$0xff] %vm1869_vm12, %v1861_v26  ;;  %v1862_v47 = vadd.f32 %v1846_v11, %v1827_v27 }
 0x48c   : > { %1881 = vst.msk [vmem:[%s3427_s25 + $0x58] sm:$0xff] %vm1869_vm12, %v1864_v22 }
 0x48d   : > { %1879 = vst.msk [vmem:[%s3427_s25 + $0x48] sm:$0xff] %vm1869_vm12, %v1862_v47 }
 0x4a3   : > { %v2292_v59 = vpop.f32.mrb[4].mxu0 }
 0x4a4   : > { %v1801_v33 = vmul.f32 %v2292_v59, %v4034_v28  ;;  %v1741_v31 = vpop.f32.mrb[5].mxu0 }
 0x4a5   : > { %v1799_v15 = vmul.f32 %v4034_v28, %v1741_v31  ;;  %v2293_v17 = vpop.f32.mrb[6].mxu0 }
 0x4a6   : > { %v1824_v58 = vadd.f32 %v4039_v41, %v1801_v33  ;;  %v1802_v32 = vmul.f32 %v2293_v17, %v4034_v28  ;;  %v1744_v4 = vpop.f32.mrb[7].mxu0 }
 0x4a7   : > { %v1822_v18 = vadd.f32 %v4039_v41, %v1799_v15  ;;  %v1800_v56 = vmul.f32 %v4034_v28, %v1744_v4 }
 0x4a8   : > { %v1859_v43 = vadd.f32 %v1843_v3, %v1824_v58  ;;  %v1825_v9 = vadd.f32 %v4039_v41, %v1802_v32 }
 0x4a9   : > { %v1857_v51 = vadd.f32 %v1841_v42, %v1822_v18  ;;  %v1823_v36 = vadd.f32 %v4039_v41, %v1800_v56 }
 0x4aa   : > { %1876 = vst.msk [vmem:[%s3427_s25 + $0x30] sm:$0xff] %vm1869_vm12, %v1859_v43  ;;  %v1860_v34 = vadd.f32 %v1844_v21, %v1825_v9 }
 0x4ab   : > { %1874 = vst.msk [vmem:[%s3427_s25 + $0x20] sm:$0xff] %vm1869_vm12, %v1857_v51  ;;  %v1858_v16 = vadd.f32 %v1842_v49, %v1823_v36 }
 0x4ac   : > { %1877 = vst.msk [vmem:[%s3427_s25 + $0x38] sm:$0xff] %vm1869_vm12, %v1860_v34 }
 0x4ad   : > { %1875 = vst.msk [vmem:[%s3427_s25 + $0x28] sm:$0xff] %vm1869_vm12, %v1858_v16 }
 0x4ae   : > { %v2300_v29 = vpop.f32.mrb[4].mxu1 }
 0x4af   : > { %v1809_v2 = vmul.f32 %v2300_v29, %v4034_v28  ;;  %v1773_v23 = vpop.f32.mrb[5].mxu1 }
 0x4b0   : > { %v1807_v62 = vmul.f32 %v4034_v28, %v1773_v23  ;;  %v2301_v6 = vpop.f32.mrb[6].mxu1 }
 0x4b1   : > { %v1832_v38 = vadd.f32 %v4039_v41, %v1809_v2  ;;  %v1810_v37 = vmul.f32 %v2301_v6, %v4034_v28  ;;  %v1776_v1 = vpop.f32.mrb[7].mxu1 }
 0x4b2   : > { %v1830_v30 = vadd.f32 %v4039_v41, %v1807_v62  ;;  %v1808_v45 = vmul.f32 %v4034_v28, %v1776_v1 }
 0x4b3   : > { %v1867_v60 = vadd.f32 %v1851_v44, %v1832_v38  ;;  %v1833_v35 = vadd.f32 %v4039_v41, %v1810_v37 }
 0x4b4   : > { %v1865_v25 = vadd.f32 %v1849_v50, %v1830_v30  ;;  %v1831_v20 = vadd.f32 %v4039_v41, %v1808_v45 }
 0x4b5   : > { %1884 = vst.msk [vmem:[%s3427_s25 + $0x70] sm:$0xff] %vm1869_vm12, %v1867_v60  ;;  %v1868_v55 = vadd.f32 %v1852_v10, %v1833_v35 }
 0x4b6   : > { %1882 = vst.msk [vmem:[%s3427_s25 + $0x60] sm:$0xff] %vm1869_vm12, %v1865_v25  ;;  %v1866_v28 = vadd.f32 %v1850_v14, %v1831_v20 }
 0x4b7   : > { %1885 = vst.msk [vmem:[%s3427_s25 + $0x78] sm:$0xff] %vm1869_vm12, %v1868_v55 }
 0x4b8   : > { %1883 = vst.msk [vmem:[%s3427_s25 + $0x68] sm:$0xff] %vm1869_vm12, %v1866_v28 }
 0x4b9   : > { %2808 = shalt.err (!%p2805_p9)
}
 0x4ba   : > { %s2809_s20 = scalar_lea.hbm %s4121_s26, 2048  ;;  %s2813_s14 = scalar_lea.hbm %s4276_s28, 8192 }
 0x4bb   : > { %p2810_p13 = scmp.ne.s32.totalorder %s4121_s26, %s2809_s20  ;;  %p2814_p4 = scmp.lt.u32.totalorder %s4121_s26, %s4276_s28 }
 0x4bc   : > { %p2815_p10 = scmp.lt.u32.totalorder %s2813_s14, %s2809_s20  ;;  %p2817_p5 = scmp.lt.u32.totalorder %s2809_s20, %s4121_s26 }
 0x4bd   : > { %p2811_p0 = pnand %p2810_p13, %p4277_p12 }
 0x4be   : > { %p2816_p8 = por %p2815_p10, %p2814_p4 }
 0x4bf   : > { %p2812_p3 = pneg %p2811_p0 }
 0x4c0   : > { %p2818_p2 = por %p2817_p5, %p2816_p8 }
 0x4c2   : > { %p2819_p7 = pnand %p2818_p2, %p2812_p3 }
 0x4c4   : > { %2822 = shalt.err (!%p2819_p7)
}
 0x4c5   : > { %s2959_s29 = smov 128   ;;  %s2960_s0 = smov 8  }
 0x4c6   : > { %2346 = dma.vmem_to_hbm [thread:$0]  (%p4277_p12), %s4123_s5, 2048, %s4121_s26, %s4133_s6, %s2959_s29, %s2959_s29, %s2960_s0  }
 0x4c7 PF: > { %s4278_s3 = sld [smem:[#allocation28_spill]]  ;;  %p2403_p6 = scmp.ge.s32.totalorder %s2937_s23, 2 }
 0x4c8   : > { %p4279_p1 = scmp.ne.s32.totalorder %s4255_s12, 0 }
 0x4ca   : > { %p2381_p11 = pnand %p2403_p6, %p4279_p1 }
 0x4cd   : > { %s1917_s24 = sand.u32 1, %s4278_s3  }
 0x4ce   : > { %s1918_s27 = scalar_lea.sflag [#allocation5], %s1917_s24 }
 0x4cf   : > { %2892 = dma.done.wait (!%p2381_p11), %s1918_s27, 2048  }
 0x4d0   : > { %2894 = vsyncadd (!%p2381_p11), %s1918_s27, 4294965248  ;;  %s31_s23 = sadd.s32 1, %s2937_s23   ;;  %s4280_s13 = sld [smem:[#allocation29_spill]] }
 0x4d1   : > { %p28_p9 = scmp.ge.s32.totalorder %s31_s23, 6   ;;  %s4281_s14 = smov %s2905_s15 }
 0x4d2   : > { %s4282_s15 = smov %s3325_s19  ;;  %s4283_s16 = smov %s2913_s17 }
 0x4d3   : > { %s4284_s17 = smov %s2917_s18  ;;  %s4285_s18 = smov %s3322_s10 }
 0x4d4   : > { %s4286_s19 = smov %s2929_s21  ;;  %s4287_s20 = smov %s2933_s22 }
 0x4d5   : > { %s4288_s21 = smov %s4291_s11  ;;  %s4289_s22 = smov %s4295_s1 }
 0x4d6   :  { %30 = sbr.rel (!%p28_p9) target bundleno = 23 (0x17), region = 157 }
 0x4dd   :  { %1923 = vsyncpa [#allocation4], 1 }
 0x4de   :  { %1925 = vsyncpa [#allocation4 + $0x1], 1 }
 0x4df   :  { %1926 = vsyncpa [#allocation7], 1 }
 0x4e0   :  { %1927 = vsyncpa [#allocation10], 1 }
 0x4e1   :  { %1928 = vsyncpa [#allocation13], 1 }
 0x4e2   :  { %1929 = vsyncpa [#allocation16], 1 }
 0x4e3   :  { %1930 = vsyncpa [#allocation19], 1 }
 0x4e4   :  { %1931 = vsyncpa [#allocation5], 1 }
 0x4e5   :  { %1933 = vsyncpa [#allocation5 + $0x1], 1 }

</bundles_post_ra>
